<compile_context>
chip_gen: v5e
topology: v5e:2x2
jax: 0.10.0
libtpu: 0.0.40
codegen_flags: <defaults>
</compile_context>

<pallas_src>
import jax
import jax.numpy as jnp
from jax.experimental import pallas as pl
from jax.experimental.pallas import tpu as pltpu

_INV_SQRT2 = 0.7071067811865476
_PARALLEL1 = pltpu.CompilerParams(dimension_semantics=("parallel",))


# ----------------------------------------------------------------------------
# In-kernel math helpers
# ----------------------------------------------------------------------------
def _gelu(x):
    # Exact-erf GELU reproduced with the Abramowitz & Stegun 7.1.26 polynomial
    # (|err| < 1.5e-7 ~ f32 eps).  The divide is routed to the EUP with
    # pl.reciprocal(approx=True) + one Newton step so it stays off the VALU path.
    z = x * _INV_SQRT2
    s = jnp.where(z >= 0.0, 1.0, -1.0)
    az = jnp.abs(z)
    d = 1.0 + 0.3275911 * az
    t = pl.reciprocal(d, approx=True)
    t = t * (2.0 - d * t)                       # Newton refine -> ~f32 accuracy
    poly = ((((1.061405429 * t - 1.453152027) * t + 1.421413741) * t
             - 0.284496736) * t + 0.254829592) * t
    erf = s * (1.0 - poly * jnp.exp(-az * az))
    return 0.5 * x * (1.0 + erf)


def _sigmoid(x):
    return 1.0 / (1.0 + jnp.exp(-x))


# ----------------------------------------------------------------------------
# Pallas kernels
# ----------------------------------------------------------------------------
def _mm_bias_kernel(x_ref, w_ref, b_ref, o_ref):
    o_ref[...] = (jnp.dot(x_ref[...].astype(jnp.bfloat16), w_ref[...],
                          preferred_element_type=jnp.float32) + b_ref[...])


def _mm_bias_res_kernel(x_ref, w_ref, b_ref, r_ref, o_ref):
    o_ref[...] = (jnp.dot(x_ref[...].astype(jnp.bfloat16), w_ref[...],
                          preferred_element_type=jnp.float32)
                  + b_ref[...] + r_ref[...])


def _mm_bias_res2_kernel(x_ref, w_ref, b_ref, r1_ref, r2_ref, o_ref):
    o_ref[...] = (jnp.dot(x_ref[...].astype(jnp.bfloat16), w_ref[...],
                          preferred_element_type=jnp.float32)
                  + b_ref[...] + r1_ref[...] + r2_ref[...])


def _block_mlp_kernel(x_ref, lnw_ref, lnb_ref, w1_ref, b1_ref, w2_ref, b2_ref,
                      g_ref, o_ref):
    # LayerNorm(channels_last, eps=1e-6) -> Linear(4C) -> GELU -> Linear(Cout) -> gamma*
    # Norm statistics / activations stay f32; matmul operands are bf16.
    x = x_ref[...]
    mu = jnp.mean(x, axis=-1, keepdims=True)
    xc = x - mu
    var = jnp.mean(xc * xc, axis=-1, keepdims=True)
    xn = xc * jax.lax.rsqrt(var + 1e-6) * lnw_ref[...] + lnb_ref[...]
    h = jnp.dot(xn.astype(jnp.bfloat16), w1_ref[...],
                preferred_element_type=jnp.float32) + b1_ref[...]
    h = _gelu(h)
    y = jnp.dot(h.astype(jnp.bfloat16), w2_ref[...],
                preferred_element_type=jnp.float32) + b2_ref[...]
    o_ref[...] = y * g_ref[...]


def _gn_silu_kernel(x_ref, m_ref, w_ref, b_ref, o_ref):
    # GroupNorm(32 groups, eps=1e-5) + SiLU; one batch sample per grid step.
    # Per-group statistics are aggregated/broadcast across the group's channels via a tiny
    # block-diagonal averaging matrix M (C x C, f32) on the MXU.  Variance is CENTERED
    # (two-pass) to avoid the E[x^2]-E[x]^2 cancellation issue.
    x = x_ref[0]                                                       # (HW, C)
    s1 = jnp.sum(x, axis=0, keepdims=True)                             # (1, C)
    mean = jnp.dot(s1, m_ref[...], preferred_element_type=jnp.float32)  # group mean per ch
    xc = x - mean
    s2 = jnp.sum(xc * xc, axis=0, keepdims=True)
    var = jnp.dot(s2, m_ref[...], preferred_element_type=jnp.float32)   # group var per ch
    y = xc * jax.lax.rsqrt(var + 1e-5)
    y = y * w_ref[...] + b_ref[...]
    o_ref[0] = y * _sigmoid(y)                                         # SiLU


def _dwconv3x3_kernel(xp_ref, w_ref, b_ref, o_ref):
    # Depthwise 3x3, padding already applied; one batch sample per grid step.
    # TODO(synk): strip-tile over H with a 1-row halo for large resolutions so the
    #             per-sample block also fits v7x's 64 MiB VMEM and pipelines.
    H = o_ref.shape[1]
    W = o_ref.shape[2]
    acc = jnp.zeros(o_ref.shape, jnp.float32)
    for dy in range(3):
        for dx in range(3):
            tap = dy * 3 + dx
            acc = acc + xp_ref[:, dy:dy + H, dx:dx + W, :] * w_ref[tap:tap + 1, :]
    o_ref[...] = acc + b_ref[...]


# ----------------------------------------------------------------------------
# Row-block planning (bigger tiles, graceful ragged handling)
# ----------------------------------------------------------------------------
def _row_plan(n):
    """Return (row_block, padded_rows)."""
    for bn in (512, 256, 128):
        if n % bn == 0:
            return bn, n
    if n <= 512:
        return n, n                      # single block (block == full dim is allowed)
    bn = 512
    return bn, pl.cdiv(n, bn) * bn       # pad tail with zero rows, slice after


def _pad_rows(a, np_rows):
    n = a.shape[0]
    if np_rows == n:
        return a
    return jnp.pad(a, ((0, np_rows - n), (0, 0)))


# ----------------------------------------------------------------------------
# Pallas wrappers (jitted so identical shapes compile the kernel only once)
# ----------------------------------------------------------------------------
@jax.jit
def matmul_bias(x, w, b, res=None, res2=None):
    """y = x @ w + b (+ res (+ res2)).  x:(N,K)  w:(K,Cout)  b:(1,Cout)."""
    N, K = x.shape
    Cout = w.shape[1]
    bn, Np = _row_plan(N)
    w = w.astype(jnp.bfloat16)           # bf16 weights: MXU-native, half VMEM/HBM traffic
    xp = _pad_rows(x, Np)
    grid = (Np // bn,)
    row_in = pl.BlockSpec((bn, K), lambda i: (i, 0))
    row_out = pl.BlockSpec((bn, Cout), lambda i: (i, 0))
    full_w = pl.BlockSpec((K, Cout), lambda i: (0, 0))
    full_b = pl.BlockSpec((1, Cout), lambda i: (0, 0))
    out_shape = jax.ShapeDtypeStruct((Np, Cout), jnp.float32)
    if res is None and res2 is None:
        y = pl.pallas_call(_mm_bias_kernel, grid=grid,
                           in_specs=[row_in, full_w, full_b],
                           out_specs=row_out, out_shape=out_shape,
                           compiler_params=_PARALLEL1)(xp, w, b)
    elif res2 is None:
        y = pl.pallas_call(_mm_bias_res_kernel, grid=grid,
                           in_specs=[row_in, full_w, full_b, row_out],
                           out_specs=row_out, out_shape=out_shape,
                           compiler_params=_PARALLEL1)(xp, w, b, _pad_rows(res, Np))
    else:
        y = pl.pallas_call(_mm_bias_res2_kernel, grid=grid,
                           in_specs=[row_in, full_w, full_b, row_out, row_out],
                           out_specs=row_out, out_shape=out_shape,
                           compiler_params=_PARALLEL1,
                           )(xp, w, b, _pad_rows(res, Np), _pad_rows(res2, Np))
    return y if Np == N else y[:N]


@jax.jit
def block_mlp(x2d, lnw, lnb, w1, b1, w2, b2, gamma):
    """Fused LayerNorm -> pwconv1 -> GELU -> pwconv2 -> gamma scaling."""
    N, C = x2d.shape
    H4 = w1.shape[1]
    Cout = w2.shape[1]
    bn, Np = _row_plan(N)
    xp = _pad_rows(x2d, Np)
    w1 = w1.astype(jnp.bfloat16)
    w2 = w2.astype(jnp.bfloat16)
    grid = (Np // bn,)
    in_specs = [pl.BlockSpec((bn, C), lambda i: (i, 0)),
                pl.BlockSpec((1, C), lambda i: (0, 0)),
                pl.BlockSpec((1, C), lambda i: (0, 0)),
                pl.BlockSpec((C, H4), lambda i: (0, 0)),
                pl.BlockSpec((1, H4), lambda i: (0, 0)),
                pl.BlockSpec((H4, Cout), lambda i: (0, 0)),
                pl.BlockSpec((1, Cout), lambda i: (0, 0)),
                pl.BlockSpec((1, Cout), lambda i: (0, 0))]
    y = pl.pallas_call(_block_mlp_kernel, grid=grid, in_specs=in_specs,
                       out_specs=pl.BlockSpec((bn, Cout), lambda i: (i, 0)),
                       out_shape=jax.ShapeDtypeStruct((Np, Cout), jnp.float32),
                       compiler_params=_PARALLEL1,
                       )(xp, lnw, lnb, w1, b1, w2, b2, gamma)
    return y if Np == N else y[:N]


@jax.jit
def gn_silu(x, w, b):
    """Fused GroupNorm(num_groups=32, eps=1e-5) + SiLU on NHWC input."""
    # TODO(synk): for large H*W, tile HW with a stats-pass + normalize-pass so each
    #             block fits v7x's 64 MiB VMEM instead of one (1, HW, C) block per sample.
    B, H, W, C = x.shape
    HW = H * W
    gs = C // 32
    gid = jnp.arange(C) // gs
    M = (gid[:, None] == gid[None, :]).astype(jnp.float32) / float(HW * gs)
    x2 = x.reshape(B, HW, C)
    out = pl.pallas_call(
        _gn_silu_kernel, grid=(B,),
        in_specs=[pl.BlockSpec((1, HW, C), lambda i: (i, 0, 0)),
                  pl.BlockSpec((C, C), lambda i: (0, 0)),
                  pl.BlockSpec((1, C), lambda i: (0, 0)),
                  pl.BlockSpec((1, C), lambda i: (0, 0))],
        out_specs=pl.BlockSpec((1, HW, C), lambda i: (i, 0, 0)),
        out_shape=jax.ShapeDtypeStruct((B, HW, C), jnp.float32),
        compiler_params=_PARALLEL1,
    )(x2, M, w, b)
    return out.reshape(B, H, W, C)


@jax.jit
def dwconv3x3(x, w9, b):
    """Depthwise 3x3 conv, padding=1, groups=C.  w9:(9,C) b:(1,C)."""
    B, H, W, C = x.shape
    xp = jnp.pad(x, ((0, 0), (1, 1), (1, 1), (0, 0)))
    return pl.pallas_call(
        _dwconv3x3_kernel, grid=(B,),
        in_specs=[pl.BlockSpec((1, H + 2, W + 2, C), lambda i: (i, 0, 0, 0)),
                  pl.BlockSpec((9, C), lambda i: (0, 0)),
                  pl.BlockSpec((1, C), lambda i: (0, 0))],
        out_specs=pl.BlockSpec((1, H, W, C), lambda i: (i, 0, 0, 0)),
        out_shape=jax.ShapeDtypeStruct((B, H, W, C), jnp.float32),
        compiler_params=_PARALLEL1,
    )(xp, w9, b)


# ----------------------------------------------------------------------------
# Module forward passes (mirroring the PyTorch structure)
# ----------------------------------------------------------------------------
def block_fwd(x, p, extra_res=None):
    """Block: dwconv -> LN -> pwconv1 -> GELU -> pwconv2 -> gamma ; out = dconv(input) + mlp
    (+ extra_res, used to fuse the RB identity-skip residual into the epilogue)."""
    B, H, W, C = x.shape
    cout = p["dconv_w"].shape[1]
    dw = dwconv3x3(x, p["dw_w"], p["dw_b"])
    mlp = block_mlp(dw.reshape(-1, C), p["ln_w"], p["ln_b"],
                    p["w1"], p["b1"], p["w2"], p["b2"], p["gamma"])
    r2 = None if extra_res is None else extra_res.reshape(-1, cout)
    # drop_path = Identity (drop_path=0.0)
    y = matmul_bias(x.reshape(-1, C), p["dconv_w"], p["dconv_b"], res=mlp, res2=r2)
    return y.reshape(B, H, W, cout)


def rb_fwd(x, p):
    h = gn_silu(x, p["gn1_w"], p["gn1_b"])
    h = block_fwd(h, p["block1"])
    h = gn_silu(h, p["gn2_w"], p["gn2_b"])
    if "skip_w" in p:
        # h = out_layers(...); return skip_conv(x) + h, residual fused into matmul epilogue
        h = block_fwd(h, p["block2"])
        B, H, W, C = x.shape
        cout = p["skip_w"].shape[1]
        y = matmul_bias(x.reshape(-1, C), p["skip_w"], p["skip_b"],
                        res=h.reshape(-1, cout))
        return y.reshape(B, H, W, cout)
    # identity skip: fuse `h + x` into block2's final 1x1-conv matmul epilogue
    return block_fwd(h, p["block2"], extra_res=x)


def rb_forward(x_nchw, params):
    x = jnp.transpose(x_nchw, (0, 2, 3, 1)).astype(jnp.float32)   # NCHW -> NHWC
    y = rb_fwd(x, params)
    return jnp.transpose(y, (0, 3, 1, 2))                         # NHWC -> NCHW


# ----------------------------------------------------------------------------
# Deterministic synthetic parameter construction (shapes match __init__)
# ----------------------------------------------------------------------------
class ParamGen:
    def __init__(self, key):
        self._key = key

    def _take(self):
        self._key, sub = jax.random.split(self._key)
        return sub

    def normal(self, shape, scale=0.05):
        return (scale * jax.random.normal(self._take(), shape)).astype(jnp.float32)


def make_block_params(pg, cin, cout):
    return dict(
        dw_w=pg.normal((9, cin)), dw_b=pg.normal((1, cin), 0.01),
        ln_w=jnp.ones((1, cin), jnp.float32), ln_b=jnp.zeros((1, cin), jnp.float32),
        w1=pg.normal((cin, 4 * cin)), b1=pg.normal((1, 4 * cin), 0.01),
        w2=pg.normal((4 * cin, cout)), b2=pg.normal((1, cout), 0.01),
        gamma=jnp.full((1, cout), 1e-6, jnp.float32),
        dconv_w=pg.normal((cin, cout)), dconv_b=pg.normal((1, cout), 0.01),
    )


def make_rb_params(pg, cin, cout):
    p = dict(
        gn1_w=jnp.ones((1, cin), jnp.float32), gn1_b=jnp.zeros((1, cin), jnp.float32),
        block1=make_block_params(pg, cin, cout),
        gn2_w=jnp.ones((1, cout), jnp.float32), gn2_b=jnp.zeros((1, cout), jnp.float32),
        block2=make_block_params(pg, cout, cout),
    )
    if cin != cout:
        p["skip_w"] = pg.normal((cin, cout))
        p["skip_b"] = pg.normal((1, cout), 0.01)
    return p


# ----------------------------------------------------------------------------
if __name__ == "__main__":
    key = jax.random.PRNGKey(0)
    k_param, k_x = jax.random.split(key)

    pg = ParamGen(k_param)
    # GroupNorm(32, C) requires C to be a multiple of 32.
    rb_skip = make_rb_params(pg, 32, 64)      # in != out -> 1x1 skip conv path
    rb_identity = make_rb_params(pg, 64, 64)  # in == out -> identity skip (fused residual)

    x = jax.random.normal(k_x, (2, 32, 16, 16), dtype=jnp.float32)

    y = rb_forward(x, rb_skip)
    y = rb_forward(y, rb_identity)
    y = jax.block_until_ready(y)

    assert y.shape == (2, 64, 16, 16), y.shape
    assert bool(jnp.all(jnp.isfinite(y)))
    print("KERNEL_OK")
</pallas_src>

<mosaic_0001>
module attributes {stable_mosaic.version = 11 : i64} {
  func.func @_gn_silu_kernel(%arg0: i32, %arg1: memref<1x256x32xf32, #tpu.memory_space<vmem>>, %arg2: memref<32x32xf32, #tpu.memory_space<vmem>>, %arg3: memref<1x32xf32, #tpu.memory_space<vmem>>, %arg4: memref<1x32xf32, #tpu.memory_space<vmem>>, %arg5: memref<1x256x32xf32, #tpu.memory_space<vmem>>) attributes {dimension_semantics = [#tpu.dimension_semantics<parallel>], iteration_bounds = array<i64: 2>, scalar_prefetch = 0 : i64, scratch_operands = 0 : i64, tpu.core_type = #tpu.core_type<tc>, window_params = [{transform_indices = @transform_0, window_bounds = array<i64: 1, 256, 32>}, {pipeline_mode = #tpu.pipeline_mode<synchronous>, transform_indices = @transform_1, window_bounds = array<i64: 32, 32>}, {pipeline_mode = #tpu.pipeline_mode<synchronous>, transform_indices = @transform_2, window_bounds = array<i64: 1, 32>}, {pipeline_mode = #tpu.pipeline_mode<synchronous>, transform_indices = @transform_3, window_bounds = array<i64: 1, 32>}, {transform_indices = @transform_4, window_bounds = array<i64: 1, 256, 32>}]} {
    %c0 = arith.constant 0 : index
    %c0_0 = arith.constant 0 : index
    %c0_1 = arith.constant 0 : index
    %0 = vector.load %arg1[%c0, %c0_0, %c0_1] : memref<1x256x32xf32, #tpu.memory_space<vmem>>, vector<1x256x32xf32>
    %1 = vector.shape_cast %0 : vector<1x256x32xf32> to vector<256x32xf32>
    %cst = arith.constant dense<0.000000e+00> : vector<32xf32>
    %2 = vector.multi_reduction <add>, %1, %cst [0] : vector<256x32xf32> to vector<32xf32>
    %3 = vector.shape_cast %2 : vector<32xf32> to vector<1x32xf32>
    %c0_2 = arith.constant 0 : index
    %c0_3 = arith.constant 0 : index
    %4 = vector.load %arg2[%c0_2, %c0_3] : memref<32x32xf32, #tpu.memory_space<vmem>>, vector<32x32xf32>
    %cst_4 = arith.constant dense<0.000000e+00> : vector<1x32xf32>
    %5 = tpu.matmul %3, %4, %cst_4 {dimension_numbers = #tpu.dot_dimension_numbers<[1], [0], [0], [1], [0, 0, 1, 1], [], []>} : vector<1x32xf32>, vector<32x32xf32>, vector<1x32xf32> -> vector<1x32xf32>
    %6 = vector.broadcast %5 : vector<1x32xf32> to vector<256x32xf32>
    %7 = arith.subf %1, %6 : vector<256x32xf32>
    %8 = arith.mulf %7, %7 : vector<256x32xf32>
    %cst_5 = arith.constant dense<0.000000e+00> : vector<32xf32>
    %9 = vector.multi_reduction <add>, %8, %cst_5 [0] : vector<256x32xf32> to vector<32xf32>
    %10 = vector.shape_cast %9 : vector<32xf32> to vector<1x32xf32>
    %c0_6 = arith.constant 0 : index
    %c0_7 = arith.constant 0 : index
    %11 = vector.load %arg2[%c0_6, %c0_7] : memref<32x32xf32, #tpu.memory_space<vmem>>, vector<32x32xf32>
    %cst_8 = arith.constant dense<0.000000e+00> : vector<1x32xf32>
    %12 = tpu.matmul %10, %11, %cst_8 {dimension_numbers = #tpu.dot_dimension_numbers<[1], [0], [0], [1], [0, 0, 1, 1], [], []>} : vector<1x32xf32>, vector<32x32xf32>, vector<1x32xf32> -> vector<1x32xf32>
    %cst_9 = arith.constant 9.99999974E-6 : f32
    %13 = vector.broadcast %cst_9 : f32 to vector<1x32xf32>
    %14 = arith.addf %12, %13 : vector<1x32xf32>
    %15 = math.rsqrt %14 : vector<1x32xf32>
    %16 = vector.broadcast %15 : vector<1x32xf32> to vector<256x32xf32>
    %17 = arith.mulf %7, %16 : vector<256x32xf32>
    %c0_10 = arith.constant 0 : index
    %c0_11 = arith.constant 0 : index
    %18 = vector.load %arg3[%c0_10, %c0_11] : memref<1x32xf32, #tpu.memory_space<vmem>>, vector<1x32xf32>
    %19 = vector.broadcast %18 : vector<1x32xf32> to vector<256x32xf32>
    %20 = arith.mulf %17, %19 : vector<256x32xf32>
    %c0_12 = arith.constant 0 : index
    %c0_13 = arith.constant 0 : index
    %21 = vector.load %arg4[%c0_12, %c0_13] : memref<1x32xf32, #tpu.memory_space<vmem>>, vector<1x32xf32>
    %22 = vector.broadcast %21 : vector<1x32xf32> to vector<256x32xf32>
    %23 = arith.addf %20, %22 : vector<256x32xf32>
    %cst_14 = arith.constant 0.000000e+00 : f32
    %24 = vector.broadcast %cst_14 : f32 to vector<256x32xf32>
    %25 = arith.subf %24, %23 : vector<256x32xf32>
    %26 = math.exp %25 : vector<256x32xf32>
    %cst_15 = arith.constant 1.000000e+00 : f32
    %27 = vector.broadcast %cst_15 : f32 to vector<256x32xf32>
    %28 = arith.addf %27, %26 : vector<256x32xf32>
    %cst_16 = arith.constant 1.000000e+00 : f32
    %29 = vector.broadcast %cst_16 : f32 to vector<256x32xf32>
    %30 = arith.divf %29, %28 : vector<256x32xf32>
    %31 = arith.mulf %23, %30 : vector<256x32xf32>
    %c0_17 = arith.constant 0 : index
    %c0_18 = arith.constant 0 : index
    %c0_19 = arith.constant 0 : index
    %32 = vector.load %arg5[%c0_17, %c0_18, %c0_19] : memref<1x256x32xf32, #tpu.memory_space<vmem>>, vector<1x256x32xf32>
    %33 = vector.shape_cast %32 : vector<1x256x32xf32> to vector<256x32xf32>
    %34 = vector.shape_cast %31 : vector<256x32xf32> to vector<1x256x32xf32>
    tpu.vector_store %arg5[%c0_17, %c0_18, %c0_19], %34 {strides = array<i32>} : memref<1x256x32xf32, #tpu.memory_space<vmem>>, vector<1x256x32xf32>,
    return
  }
  func.func @transform_0(%arg0: i32) -> (i32, i32, i32) {
    %c0_i32 = arith.constant 0 : i32
    %c0_i32_0 = arith.constant 0 : i32
    %c0_i32_1 = arith.constant 0 : i32
    return %arg0, %c0_i32, %c0_i32_0 : i32, i32, i32
  }
  func.func @transform_1(%arg0: i32) -> (i32, i32) {
    %c0_i32 = arith.constant 0 : i32
    %c0_i32_0 = arith.constant 0 : i32
    %c0_i32_1 = arith.constant 0 : i32
    return %c0_i32, %c0_i32_0 : i32, i32
  }
  func.func @transform_2(%arg0: i32) -> (i32, i32) {
    %c0_i32 = arith.constant 0 : i32
    %c0_i32_0 = arith.constant 0 : i32
    %c0_i32_1 = arith.constant 0 : i32
    return %c0_i32, %c0_i32_0 : i32, i32
  }
  func.func @transform_3(%arg0: i32) -> (i32, i32) {
    %c0_i32 = arith.constant 0 : i32
    %c0_i32_0 = arith.constant 0 : i32
    %c0_i32_1 = arith.constant 0 : i32
    return %c0_i32, %c0_i32_0 : i32, i32
  }
  func.func @transform_4(%arg0: i32) -> (i32, i32, i32) {
    %c0_i32 = arith.constant 0 : i32
    %c0_i32_0 = arith.constant 0 : i32
    %c0_i32_1 = arith.constant 0 : i32
    return %arg0, %c0_i32, %c0_i32_0 : i32, i32, i32
  }
}

</mosaic_0001>

<bundles_post_ra>
// kernel: gn_silu.1
= control target key start
LH: loop header
LB: loop body
LE: loop exit
PB: predicated region body
PF: predicated region fallthrough
CT: control target
= control target key end

     0   :  { %9 = vsyncpa [#allocation3], 0  ;;  %s3693_s0 = inlined_call_operand.hbm [shape: f32[2,256,32], index: 0, kind: input, shape index: {}]   ;;  %s3694_s1 = inlined_call_operand.vmem [shape: f32[32,32], index: 1, kind: input, shape index: {}]   ;;  %s3695_s2 = inlined_call_operand.vmem [shape: f32[1,32], index: 2, kind: input, shape index: {}]   ;;  %s3696_s3 = inlined_call_operand.vmem [shape: f32[1,32], index: 3, kind: input, shape index: {}]   ;;  %s3697_s4 = inlined_call_operand.hbm [shape: f32[2,256,32], index: 4, kind: output, shape index: {}]  }
   0x1   :  { %11 = vsyncpa [#allocation3 + $0x1], 0 }
   0x2   :  { %12 = vsyncpa [#allocation4], 0 }
   0x3   :  { %14 = vsyncpa [#allocation4 + $0x1], 0  ;;  %s1707_s15 = smov 0   ;;  %s1709_s16 = smov 0  }
   0x4   :  { %s1711_s17 = smov 0   ;;  %s1713_s18 = smov 0  }
   0x5 LB: > { %s1728_s19 = sadd.s32 4294967295, %s1676_s18   ;;  %s1380_s20 = sadd.s32 4294967294, %s1676_s18   ;;  %s1676_s18 = sphi %s1713_s18, %s4007_s18   ;;  %s1672_s17 = sphi %s1711_s17, %s4006_s17   ;;  %s1668_s16 = sphi %s1709_s16, %s4005_s16   ;;  %s1664_s15 = sphi %s1707_s15, %s4004_s15  }
   0x6   : > { %s1732_s21 = sadd.s32 1, %s1676_s18   ;;  %s27_s22 = sadd.s32 1, %s1672_s17 }
   0x7   : > { %s24_s23 = ssub.s32 %s1676_s18, %s1732_s21  ;;  %p34_p0 = scmp.ne.s32.totalorder %s1672_s17, %s1668_s16 }
   0x8   : > { %p25_p1 = scmp.eq.s32.totalorder %s24_s23, 0  ;;  %p35_p2 = scmp.eq.s32.totalorder %s1676_s18, 0 }
   0x9   : > { %p40_p3 = scmp.ne.s32.totalorder %s1668_s16, %s1664_s15  ;;  %p41_p4 = scmp.eq.s32.totalorder %s1728_s19, 0 }
   0xa   : > { %s1744_s24 = scalar_select %p25_p1, %s1672_s17, %s27_s22  }
   0xb   : > { %p1746_p5 = por %p35_p2, %p34_p0  ;;  %p1750_p6 = por %p41_p4, %p40_p3 }
   0xc   : > { %p127_p7 = scmp.eq.s32.totalorder %s1728_s19, 1  ;;  %p133_p8 = scmp.eq.s32.totalorder %s1380_s20, 1 }
   0xd   : > { %p1410_p10 = scmp.lt.s32.totalorder %s1676_s18, 2  ;;  %s162_s29 = sand.u32 1, %s1672_s17  }
   0xe   : > { %p1757_p11 = por %p127_p7, %p34_p0  ;;  %p1761_p12 = por %p133_p8, %p40_p3 }
   0xf   : > { %s1396_s30 = sshll.u32 %s1676_s18, 8  ;;  %s1383_s5 = sshll.u32 %s162_s29, 8 }
  0x10   : > { %s171_s8 = scalar_lea.hbm %s3693_s0, %s1396_s30  ;;  %s166_s10 = scalar_lea.vmem [#allocation2], %s1383_s5 }
  0x11   : > { %s172_s9 = sshll.u32 %s171_s8, 4  ;;  %s174_s11 = sshll.u32 %s166_s10, 4  ;;  %s173_s9 = int_to_ptr.hbm [resolvable:$true] %s172_s9  ;;  %s175_s11 = int_to_ptr.vmem [resolvable:$true] %s174_s11 }
  0x12   : > { %p1772_p13 = pnand %p1410_p10, %p1746_p5  ;;  %p1386_p0 = scmp.ge.s32.totalorder %s1676_s18, 1 }
  0x13   : > { %p182_p1 = scmp.lt.s32.totalorder %s1676_s18, 3  ;;  %s163_s13 = scalar_lea.sflag [#allocation3], %s162_s29 }
  0x14   : > { %s1580_s14 = sshra.s32 %s173_s9, 4  ;;  %p1584_p3 = pneg %p1772_p13  ;;  %s1581_s14 = int_to_ptr.hbm [resolvable:$true] %s1580_s14 }
  0x15   : > { %s1582_s20 = scalar_lea.hbm %s1581_s14, 256  ;;  %s1587_s25 = scalar_lea.hbm %s3693_s0, 512 }
  0x16   : > { %p1583_p2 = scmp.ne.s32.totalorder %s1581_s14, %s1582_s20  ;;  %p1588_p5 = scmp.lt.s32.totalorder %s1581_s14, %s3693_s0 }
  0x17   : > { %p1589_p8 = scmp.lt.s32.totalorder %s1587_s25, %s1582_s20 }
  0x18   : > { %p1585_p4 = pnand %p1584_p3, %p1583_p2 }
  0x19   : > { %p1590_p10 = por %p1589_p8, %p1588_p5 }
  0x1a   : > { %p1586_p7 = pneg %p1585_p4 }
  0x1c   : > { %p1591_p9 = pnand %p1590_p10, %p1586_p7 }
  0x1e   : > { %1594 = shalt.err (!%p1591_p9)
}
  0x1f   : > { %s1678_s29 = smov 128   ;;  %s1679_s6 = smov 8  }
  0x20   : > { %1405 = dma.hbm_to_vmem [thread:$0]  (!%p1772_p13), %s173_s9, 4096, %s175_s11, %s163_s13, %s1678_s29, %s1678_s29, %s1679_s6  }
  0x21   : > { %p183_p2 = pnand %p1386_p0, %p182_p1 }
  0x23   : > { %186 = sbr.rel (%p183_p2) target bundleno = 660 (0x294), region = 36 }
  0x28   : > { %s1793_s7 = sand.u32 1, %s1668_s16  }
  0x29   : > { %s1387_s8 = sshll.u32 %s1793_s7, 8  ;;  %s189_s10 = scalar_lea.sflag [#allocation3], %s1793_s7 }
  0x2a   : > { %s1799_s14 = scalar_lea.vmem [#allocation2], %s1387_s8 }
  0x2b   : > { %1655 = dma.done.wait (%p1750_p6), %s189_s10, 4096  }
  0x2c   : > { %1657 = vsyncadd (%p1750_p6), %s189_s10, 4294963200  ;;  %vm3740_vm0 = vcmask 261120   ;;  %v1806_v0 = vld [vmem:[%s1799_s14] sm:$0xff]  ;;  %v1809_v1 = vld [vmem:[%s1799_s14 + $0x8] sm:$0xff]  ;;  %s3347_s6 = scalar_lea.vmem [#allocation5], %s1387_s8  ;;  %s1397_s8 = sshll.u32 %s1728_s19, 8 }
  0x2d   : > { %v1812_v2 = vld [vmem:[%s1799_s14 + $0x10] sm:$0xff]  ;;  %v1815_v3 = vld [vmem:[%s1799_s14 + $0x18] sm:$0xff]  ;;  %v251_v4 = vsel %vm3740_vm0, %v1806_v0, 0.0  ;;  %v252_v5 = vsel %vm3740_vm0, %v1809_v1, 0.0  ;;  %v1824_v7 = vld [vmem:[%s1799_s14 + $0x20] sm:$0xff]  ;;  %s1304_s26 = sshll.u32 %s3347_s6, 4  ;;  %s1305_s26 = int_to_ptr.vmem [resolvable:$true] %s1304_s26 }
  0x2e   : > { %v254_v6 = vsel %vm3740_vm0, %v1812_v2, 0.0  ;;  %v253_v8 = vadd.f32 %v252_v5, %v251_v4  ;;  %v256_v9 = vsel %vm3740_vm0, %v1815_v3, 0.0  ;;  %v1829_v10 = vld [vmem:[%s1799_s14 + $0x28] sm:$0xff]  ;;  %v258_v12 = vsel %vm3740_vm0, %v1824_v7, 0.0  ;;  %v1834_v13 = vld [vmem:[%s1799_s14 + $0x30] sm:$0xff]  ;;  %v1839_v16 = vld [vmem:[%s1799_s14 + $0x38] sm:$0xff] }
  0x2f   : > { %v260_v15 = vsel %vm3740_vm0, %v1829_v10, 0.0  ;;  %v262_v18 = vsel %vm3740_vm0, %v1834_v13, 0.0  ;;  %v1844_v19 = vld [vmem:[%s1799_s14 + $0x40] sm:$0xff]  ;;  %v264_v21 = vsel %vm3740_vm0, %v1839_v16, 0.0  ;;  %v1849_v22 = vld [vmem:[%s1799_s14 + $0x48] sm:$0xff]  ;;  %v1854_v25 = vld [vmem:[%s1799_s14 + $0x50] sm:$0xff] }
  0x30   : > { %v255_v11 = vadd.f32 %v254_v6, %v253_v8  ;;  %v266_v24 = vsel %vm3740_vm0, %v1844_v19, 0.0  ;;  %v268_v27 = vsel %vm3740_vm0, %v1849_v22, 0.0  ;;  %v1859_v28 = vld [vmem:[%s1799_s14 + $0x58] sm:$0xff]  ;;  %v270_v30 = vsel %vm3740_vm0, %v1854_v25, 0.0  ;;  %v1864_v31 = vld [vmem:[%s1799_s14 + $0x60] sm:$0xff]  ;;  %v1869_v34 = vld [vmem:[%s1799_s14 + $0x68] sm:$0xff] }
  0x31   : > { %v272_v33 = vsel %vm3740_vm0, %v1859_v28, 0.0  ;;  %v274_v36 = vsel %vm3740_vm0, %v1864_v31, 0.0  ;;  %v1874_v37 = vld [vmem:[%s1799_s14 + $0x70] sm:$0xff]  ;;  %v276_v39 = vsel %vm3740_vm0, %v1869_v34, 0.0  ;;  %v1879_v40 = vld [vmem:[%s1799_s14 + $0x78] sm:$0xff]  ;;  %v1884_v43 = vld [vmem:[%s1799_s14 + $0x80] sm:$0xff] }
  0x32   : > { %v257_v14 = vadd.f32 %v256_v9, %v255_v11  ;;  %v278_v42 = vsel %vm3740_vm0, %v1874_v37, 0.0  ;;  %v280_v45 = vsel %vm3740_vm0, %v1879_v40, 0.0  ;;  %v1889_v46 = vld [vmem:[%s1799_s14 + $0x88] sm:$0xff]  ;;  %v282_v48 = vsel %vm3740_vm0, %v1884_v43, 0.0  ;;  %v1894_v49 = vld [vmem:[%s1799_s14 + $0x90] sm:$0xff]  ;;  %v1899_v52 = vld [vmem:[%s1799_s14 + $0x98] sm:$0xff] }
  0x33   : > { %v284_v51 = vsel %vm3740_vm0, %v1889_v46, 0.0  ;;  %v286_v54 = vsel %vm3740_vm0, %v1894_v49, 0.0  ;;  %v1904_v55 = vld [vmem:[%s1799_s14 + $0xa0] sm:$0xff]  ;;  %v288_v57 = vsel %vm3740_vm0, %v1899_v52, 0.0  ;;  %v1909_v58 = vld [vmem:[%s1799_s14 + $0xa8] sm:$0xff]  ;;  %v323_v60 = vld [vmem:[%s3694_s1 + $0x18] sm:$0xff] }
  0x34   : > { %v259_v17 = vadd.f32 %v258_v12, %v257_v14  ;;  %v290_v61 = vsel %vm3740_vm0, %v1904_v55, 0.0  ;;  %339 = vmatpush.msra.mxu0 %v323_v60  ;;  %496 = vmatpush.msra.mxu1 %v323_v60  ;;  %v1917_v62 = vld [vmem:[%s1799_s14 + $0xb0] sm:$0xff]  ;;  %v292_v5 = vsel %vm3740_vm0, %v1909_v58, 0.0  ;;  %v1925_v6 = vld [vmem:[%s1799_s14 + $0xb8] sm:$0xff]  ;;  %v321_v9 = vld [vmem:[%s3694_s1 + $0x8] sm:$0xff]  ;;  %s1292_s11 = scalar_lea.sflag [#allocation4], %s1793_s7 }
  0x35   : > { %v322_v4 = vld [vmem:[%s3694_s1 + $0x10] sm:$0xff]  ;;  %v294_v11 = vsel %vm3740_vm0, %v1917_v62, 0.0  ;;  %v1933_v12 = vld [vmem:[%s1799_s14 + $0xc0] sm:$0xff]  ;;  %s1630_s23 = scalar_lea.hbm %s3697_s4, 512 }
  0x36   : > { %v261_v20 = vadd.f32 %v260_v15, %v259_v17  ;;  %340 = vmatpush.msra.mxu0 %v322_v4  ;;  %497 = vmatpush.msra.mxu1 %v322_v4  ;;  %v320_v15 = vld [vmem:[%s3694_s1] sm:$0xff]  ;;  %v296_v17 = vsel %vm3740_vm0, %v1925_v6, 0.0 }
  0x38   : > { %v263_v23 = vadd.f32 %v262_v18, %v261_v20  ;;  %341 = vmatpush.msra.mxu0 %v321_v9  ;;  %498 = vmatpush.msra.mxu1 %v321_v9  ;;  %v1941_v18 = vld [vmem:[%s1799_s14 + $0xc8] sm:$0xff] }
  0x3a   : > { %v265_v26 = vadd.f32 %v264_v21, %v263_v23  ;;  %342 = vmatpush.msra.mxu0 %v320_v15  ;;  %499 = vmatpush.msra.mxu1 %v320_v15  ;;  %v298_v21 = vsel %vm3740_vm0, %v1933_v12, 0.0  ;;  %v1946_v23 = vld [vmem:[%s1799_s14 + $0xd0] sm:$0xff] }
  0x3c   : > { %v267_v29 = vadd.f32 %v266_v24, %v265_v26  ;;  %v300_v26 = vsel %vm3740_vm0, %v1941_v18, 0.0 }
  0x3e   : > { %v269_v32 = vadd.f32 %v268_v27, %v267_v29  ;;  %v1951_v27 = vld [vmem:[%s1799_s14 + $0xd8] sm:$0xff] }
  0x40   : > { %v271_v35 = vadd.f32 %v270_v30, %v269_v32  ;;  %v302_v30 = vsel %vm3740_vm0, %v1946_v23, 0.0  ;;  %v1956_v32 = vld [vmem:[%s1799_s14 + $0xe0] sm:$0xff] }
  0x42   : > { %v273_v38 = vadd.f32 %v272_v33, %v271_v35  ;;  %v304_v35 = vsel %vm3740_vm0, %v1951_v27, 0.0 }
  0x44   : > { %v275_v41 = vadd.f32 %v274_v36, %v273_v38  ;;  %v1961_v36 = vld [vmem:[%s1799_s14 + $0xe8] sm:$0xff] }
  0x46   : > { %v277_v44 = vadd.f32 %v276_v39, %v275_v41  ;;  %v306_v39 = vsel %vm3740_vm0, %v1956_v32, 0.0  ;;  %v1966_v41 = vld [vmem:[%s1799_s14 + $0xf0] sm:$0xff] }
  0x48   : > { %v279_v47 = vadd.f32 %v278_v42, %v277_v44  ;;  %v308_v44 = vsel %vm3740_vm0, %v1961_v36, 0.0 }
  0x4a   : > { %v281_v50 = vadd.f32 %v280_v45, %v279_v47  ;;  %v1971_v45 = vld [vmem:[%s1799_s14 + $0xf8] sm:$0xff]  ;;  %s1303_s14 = scalar_lea.hbm %s3697_s4, %s1397_s8 }
  0x4b   : > { %s1306_s9 = sshll.u32 %s1303_s14, 4  ;;  %s1307_s9 = int_to_ptr.hbm [resolvable:$true] %s1306_s9 }
  0x4c   : > { %v283_v53 = vadd.f32 %v282_v48, %v281_v50  ;;  %v310_v48 = vsel %vm3740_vm0, %v1966_v41, 0.0  ;;  %s1624_s12 = sshra.s32 %s1307_s9, 4  ;;  %s1625_s12 = int_to_ptr.hbm [resolvable:$true] %s1624_s12 }
  0x4d   : > { %s1626_s13 = scalar_lea.hbm %s1625_s12, 256  ;;  %p1631_p0 = scmp.lt.s32.totalorder %s1625_s12, %s3697_s4 }
  0x4e   : > { %v285_v56 = vadd.f32 %v284_v51, %v283_v53  ;;  %v312_v51 = vsel %vm3740_vm0, %v1971_v45, 0.0  ;;  %p1627_p6 = scmp.ne.s32.totalorder %s1625_s12, %s1626_s13  ;;  %p1632_p1 = scmp.lt.s32.totalorder %s1630_s23, %s1626_s13 }
  0x50   : > { %v287_v59 = vadd.f32 %v286_v54, %v285_v56  ;;  %p1628_p9 = pnand %p1627_p6, %p1757_p11  ;;  %p1633_p3 = por %p1632_p1, %p1631_p0 }
  0x52   : > { %v289_v63 = vadd.f32 %v288_v57, %v287_v59  ;;  %p1629_p13 = pneg %p1628_p9 }
  0x54   : > { %v291_v8 = vadd.f32 %v290_v61, %v289_v63  ;;  %p1634_p4 = pnand %p1633_p3, %p1629_p13 }
  0x56   : > { %v293_v14 = vadd.f32 %v292_v5, %v291_v8 }
  0x58   : > { %v295_v20 = vadd.f32 %v294_v11, %v293_v14 }
  0x5a   : > { %v297_v24 = vadd.f32 %v296_v17, %v295_v20 }
  0x5c   : > { %v299_v29 = vadd.f32 %v298_v21, %v297_v24 }
  0x5e   : > { %v301_v33 = vadd.f32 %v300_v26, %v299_v29 }
  0x60   : > { %v303_v38 = vadd.f32 %v302_v30, %v301_v33 }
  0x62   : > { %v305_v42 = vadd.f32 %v304_v35, %v303_v38 }
  0x64   : > { %v307_v47 = vadd.f32 %v306_v39, %v305_v42 }
  0x66   : > { %v309_v50 = vadd.f32 %v308_v44, %v307_v47 }
  0x68   : > { %v311_v53 = vadd.f32 %v310_v48, %v309_v50 }
  0x6a   : > { %v313_v54 = vadd.f32 %v312_v51, %v311_v53 }
  0x6c   : > { %v314_v56 = vrot.slane %v313_v54, 4 }
  0x6e   : > { %v315_v57 = vadd.f32 %v314_v56, %v313_v54 }
  0x70   : > { %v316_v59 = vrot.slane %v315_v57, 2 }
  0x72   : > { %v317_v60 = vadd.f32 %v316_v59, %v315_v57 }
  0x74   : > { %v318_v61 = vrot.slane %v317_v60, 1 }
  0x76   : > { %v319_v63 = vadd.f32 %v318_v61, %v317_v60 }
  0x78   : > { %1389 = vmatmul.msk.f32.vlgmr.msra.gmra.mxu0 %vm3740_vm0, %v319_v63 }
  0xf5   : > { %v344_v4 = vpop.f32.mrf.mxu0 }
  0xf6   : > { %v1978_v5 = vperm.slane %v344_v4, 0 }
  0xf8   : > { %v1982_v8 = vsub.f32 %v1806_v0, %v1978_v5  ;;  %v1986_v9 = vsub.f32 %v1809_v1, %v1978_v5  ;;  %v1990_v11 = vsub.f32 %v1812_v2, %v1978_v5  ;;  %v1994_v14 = vsub.f32 %v1815_v3, %v1978_v5 }
  0xf9   : > { %v2002_v0 = vsub.f32 %v1824_v7, %v1978_v5  ;;  %v2008_v2 = vsub.f32 %v1829_v10, %v1978_v5  ;;  %v2016_v26 = vsub.f32 %v1834_v13, %v1978_v5  ;;  %v2023_v10 = vsub.f32 %v1839_v16, %v1978_v5 }
  0xfa   : > { %v380_v15 = vmul.f32 %v1982_v8, %v1982_v8  ;;  %v381_v17 = vmul.f32 %v1986_v9, %v1986_v9  ;;  %v382_v1 = vmul.f32 %v1990_v11, %v1990_v11  ;;  %v383_v3 = vmul.f32 %v1994_v14, %v1994_v14 }
  0xfb   : > { %v384_v7 = vmul.f32 %v2002_v0, %v2002_v0  ;;  %v385_v33 = vmul.f32 %v2008_v2, %v2008_v2  ;;  %v2030_v13 = vsub.f32 %v1844_v19, %v1978_v5  ;;  %v386_v39 = vmul.f32 %v2016_v26, %v2016_v26 }
  0xfc   : > { %v412_v20 = vsel %vm3740_vm0, %v380_v15, 0.0  ;;  %v413_v21 = vsel %vm3740_vm0, %v381_v17, 0.0  ;;  %v415_v29 = vsel %vm3740_vm0, %v382_v1, 0.0  ;;  %v417_v35 = vsel %vm3740_vm0, %v383_v3, 0.0 }
  0xfd   : > { %v414_v24 = vadd.f32 %v413_v21, %v412_v20  ;;  %v419_v42 = vsel %vm3740_vm0, %v384_v7, 0.0  ;;  %v2037_v16 = vsub.f32 %v1849_v22, %v1978_v5  ;;  %v387_v47 = vmul.f32 %v2023_v10, %v2023_v10 }
  0xfe   : > { %v421_v48 = vsel %vm3740_vm0, %v385_v33, 0.0  ;;  %v2044_v19 = vsub.f32 %v1854_v25, %v1978_v5  ;;  %v388_v51 = vmul.f32 %v2030_v13, %v2030_v13  ;;  %v423_v53 = vsel %vm3740_vm0, %v386_v39, 0.0 }
  0xff   : > { %v416_v30 = vadd.f32 %v415_v29, %v414_v24  ;;  %v2051_v22 = vsub.f32 %v1859_v28, %v1978_v5  ;;  %v389_v56 = vmul.f32 %v2037_v16, %v2037_v16  ;;  %v425_v57 = vsel %vm3740_vm0, %v387_v47, 0.0 }
 0x100   : > { %v2058_v25 = vsub.f32 %v1864_v31, %v1978_v5  ;;  %v390_v60 = vmul.f32 %v2044_v19, %v2044_v19  ;;  %v427_v61 = vsel %vm3740_vm0, %v388_v51, 0.0  ;;  %v2065_v28 = vsub.f32 %v1869_v34, %v1978_v5 }
 0x101   : > { %v418_v38 = vadd.f32 %v417_v35, %v416_v30  ;;  %v391_v4 = vmul.f32 %v2051_v22, %v2051_v22  ;;  %v429_v15 = vsel %vm3740_vm0, %v389_v56, 0.0  ;;  %v2072_v31 = vsub.f32 %v1874_v37, %v1978_v5 }
 0x102   : > { %v392_v1 = vmul.f32 %v2058_v25, %v2058_v25  ;;  %v431_v3 = vsel %vm3740_vm0, %v390_v60, 0.0  ;;  %v2079_v34 = vsub.f32 %v1879_v40, %v1978_v5  ;;  %v393_v21 = vmul.f32 %v2065_v28, %v2065_v28 }
 0x103   : > { %v420_v44 = vadd.f32 %v419_v42, %v418_v38  ;;  %v433_v24 = vsel %vm3740_vm0, %v391_v4, 0.0  ;;  %v2086_v37 = vsub.f32 %v1884_v43, %v1978_v5  ;;  %v394_v29 = vmul.f32 %v2072_v31, %v2072_v31 }
 0x104   : > { %v435_v30 = vsel %vm3740_vm0, %v392_v1, 0.0  ;;  %v2093_v40 = vsub.f32 %v1889_v46, %v1978_v5  ;;  %v395_v35 = vmul.f32 %v2079_v34, %v2079_v34  ;;  %v437_v38 = vsel %vm3740_vm0, %v393_v21, 0.0 }
 0x105   : > { %v422_v50 = vadd.f32 %v421_v48, %v420_v44  ;;  %v2100_v43 = vsub.f32 %v1894_v49, %v1978_v5  ;;  %v396_v42 = vmul.f32 %v2086_v37, %v2086_v37  ;;  %v439_v44 = vsel %vm3740_vm0, %v394_v29, 0.0 }
 0x106   : > { %v2107_v46 = vsub.f32 %v1899_v52, %v1978_v5  ;;  %v397_v48 = vmul.f32 %v2093_v40, %v2093_v40  ;;  %v2114_v49 = vsub.f32 %v1904_v55, %v1978_v5  ;;  %v2121_v52 = vsub.f32 %v1909_v58, %v1978_v5 }
 0x107   : > { %v424_v54 = vadd.f32 %v423_v53, %v422_v50  ;;  %v441_v50 = vsel %vm3740_vm0, %v395_v35, 0.0  ;;  %v398_v53 = vmul.f32 %v2100_v43, %v2100_v43  ;;  %v2128_v55 = vsub.f32 %v1917_v62, %v1978_v5 }
 0x108   : > { %v2135_v58 = vsub.f32 %v1925_v6, %v1978_v5  ;;  %v2142_v62 = vsub.f32 %v1933_v12, %v1978_v5  ;;  %v2149_v6 = vsub.f32 %v1941_v18, %v1978_v5  ;;  %v2156_v12 = vsub.f32 %v1946_v23, %v1978_v5 }
 0x109   : > { %v426_v59 = vadd.f32 %v425_v57, %v424_v54  ;;  %v443_v54 = vsel %vm3740_vm0, %v396_v42, 0.0  ;;  %v399_v57 = vmul.f32 %v2107_v46, %v2107_v46  ;;  %v2163_v18 = vsub.f32 %v1951_v27, %v1978_v5 }
 0x10a   : > { %v2170_v23 = vsub.f32 %v1956_v32, %v1978_v5  ;;  %v2177_v27 = vsub.f32 %v1961_v36, %v1978_v5  ;;  %v2184_v32 = vsub.f32 %v1966_v41, %v1978_v5  ;;  %v2191_v36 = vsub.f32 %v1971_v45, %v1978_v5 }
 0x10b   : > { %v428_v63 = vadd.f32 %v427_v61, %v426_v59  ;;  %v445_v59 = vsel %vm3740_vm0, %v397_v48, 0.0  ;;  %v400_v61 = vmul.f32 %v2114_v49, %v2114_v49 }
 0x10c   : > { %v410_v41 = vmul.f32 %v2184_v32, %v2184_v32 }
 0x10d   : > { %v430_v17 = vadd.f32 %v429_v15, %v428_v63  ;;  %v447_v63 = vsel %vm3740_vm0, %v398_v53, 0.0  ;;  %v401_v15 = vmul.f32 %v2121_v52, %v2121_v52 }
 0x10e   : > { %v471_v45 = vsel %vm3740_vm0, %v410_v41, 0.0 }
 0x10f   : > { %v432_v20 = vadd.f32 %v431_v3, %v430_v17  ;;  %v449_v17 = vsel %vm3740_vm0, %v399_v57, 0.0  ;;  %v402_v3 = vmul.f32 %v2128_v55, %v2128_v55 }
 0x111   : > { %v434_v7 = vadd.f32 %v433_v24, %v432_v20  ;;  %v451_v20 = vsel %vm3740_vm0, %v400_v61, 0.0  ;;  %v403_v24 = vmul.f32 %v2135_v58, %v2135_v58 }
 0x113   : > { %v436_v33 = vadd.f32 %v435_v30, %v434_v7  ;;  %v453_v7 = vsel %vm3740_vm0, %v401_v15, 0.0  ;;  %v404_v30 = vmul.f32 %v2142_v62, %v2142_v62  ;;  %v411_v15 = vmul.f32 %v2191_v36, %v2191_v36 }
 0x115   : > { %v438_v39 = vadd.f32 %v437_v38, %v436_v33  ;;  %v455_v33 = vsel %vm3740_vm0, %v402_v3, 0.0  ;;  %v405_v38 = vmul.f32 %v2149_v6, %v2149_v6  ;;  %v473_v3 = vsel %vm3740_vm0, %v411_v15, 0.0 }
 0x117   : > { %v440_v47 = vadd.f32 %v439_v44, %v438_v39  ;;  %v457_v39 = vsel %vm3740_vm0, %v403_v24, 0.0  ;;  %v406_v44 = vmul.f32 %v2156_v12, %v2156_v12 }
 0x119   : > { %v442_v51 = vadd.f32 %v441_v50, %v440_v47  ;;  %v459_v47 = vsel %vm3740_vm0, %v404_v30, 0.0  ;;  %v407_v50 = vmul.f32 %v2163_v18, %v2163_v18 }
 0x11b   : > { %v444_v56 = vadd.f32 %v443_v54, %v442_v51  ;;  %v461_v51 = vsel %vm3740_vm0, %v405_v38, 0.0  ;;  %v408_v54 = vmul.f32 %v2170_v23, %v2170_v23 }
 0x11d   : > { %v446_v60 = vadd.f32 %v445_v59, %v444_v56  ;;  %v463_v56 = vsel %vm3740_vm0, %v406_v44, 0.0  ;;  %v409_v59 = vmul.f32 %v2177_v27, %v2177_v27 }
 0x11f   : > { %v448_v4 = vadd.f32 %v447_v63, %v446_v60  ;;  %v465_v60 = vsel %vm3740_vm0, %v407_v50, 0.0  ;;  %v467_v63 = vsel %vm3740_vm0, %v408_v54, 0.0 }
 0x121   : > { %v450_v1 = vadd.f32 %v449_v17, %v448_v4  ;;  %v469_v17 = vsel %vm3740_vm0, %v409_v59, 0.0 }
 0x123   : > { %v452_v21 = vadd.f32 %v451_v20, %v450_v1 }
 0x125   : > { %v454_v29 = vadd.f32 %v453_v7, %v452_v21 }
 0x127   : > { %v456_v35 = vadd.f32 %v455_v33, %v454_v29 }
 0x129   : > { %v458_v42 = vadd.f32 %v457_v39, %v456_v35 }
 0x12b   : > { %v460_v48 = vadd.f32 %v459_v47, %v458_v42 }
 0x12d   : > { %v462_v53 = vadd.f32 %v461_v51, %v460_v48 }
 0x12f   : > { %v464_v57 = vadd.f32 %v463_v56, %v462_v53 }
 0x131   : > { %v466_v61 = vadd.f32 %v465_v60, %v464_v57 }
 0x133   : > { %v468_v4 = vadd.f32 %v467_v63, %v466_v61 }
 0x135   : > { %v470_v1 = vadd.f32 %v469_v17, %v468_v4 }
 0x137   : > { %v472_v5 = vadd.f32 %v471_v45, %v470_v1 }
 0x139   : > { %v474_v20 = vadd.f32 %v473_v3, %v472_v5 }
 0x13b   : > { %v475_v21 = vrot.slane %v474_v20, 4 }
 0x13d   : > { %v476_v24 = vadd.f32 %v475_v21, %v474_v20 }
 0x13f   : > { %v477_v7 = vrot.slane %v476_v24, 2 }
 0x141   : > { %v478_v29 = vadd.f32 %v477_v7, %v476_v24 }
 0x143   : > { %v479_v30 = vrot.slane %v478_v29, 1 }
 0x145   : > { %v480_v33 = vadd.f32 %v479_v30, %v478_v29 }
 0x147   : > { %1390 = vmatmul.msk.f32.vlgmr.msra.gmra.mxu1 %vm3740_vm0, %v480_v33 }
 0x1c4   : > { %v501_v35 = vpop.f32.mrf.mxu1 }
 0x1c5   : > { %v502_v38 = vadd.f32 1e-05, %v501_v35 }
 0x1c7   : > { %1450 = vrsqrt.f32 %v502_v38  ;;  %vm510_vm2 = vweird.f32 %v502_v38 }
 0x1cd   : > { %v1451_v39 = vpop.eup %1450 }
 0x1ce   : > { %v505_v42 = vmul.f32 %v1451_v39, %v502_v38  ;;  %vm511_vm1 = vweird.f32 %v1451_v39 }
 0x1cf   : > { %vm512_vm3 = vmor %vm510_vm2, %vm511_vm1 }
 0x1d0   : > { %v506_v44 = vmul.f32 %v1451_v39, %v505_v42 }
 0x1d2   : > { %v507_v47 = vmul.f32 0.5, %v506_v44 }
 0x1d4   : > { %v508_v48 = vsub.f32 1.5, %v507_v47 }
 0x1d6   : > { %v509_v50 = vmul.f32 %v1451_v39, %v508_v48 }
 0x1d8   : > { %v513_v51 = vsel %vm512_vm3, %v1451_v39, %v509_v50 }
 0x1d9   : > { %v514_v53 = vperm.slane %v513_v51, 0 }
 0x1db   : > { %v515_v54 = vmul.f32 %v514_v53, %v1982_v8  ;;  %v516_v56 = vmul.f32 %v514_v53, %v1986_v9  ;;  %v517_v57 = vmul.f32 %v514_v53, %v1990_v11  ;;  %v518_v59 = vmul.f32 %v514_v53, %v1994_v14 }
 0x1dc   : > { %v519_v60 = vmul.f32 %v514_v53, %v2002_v0  ;;  %v520_v61 = vmul.f32 %v514_v53, %v2008_v2  ;;  %v521_v41 = vmul.f32 %v514_v53, %v2016_v26  ;;  %v522_v63 = vmul.f32 %v514_v53, %v2023_v10  ;;  %v1448_v2 = vld [vmem:[%s3695_s2] ss:$0 sm:$0xff] }
 0x1dd   : > { %v523_v4 = vmul.f32 %v514_v53, %v2030_v13  ;;  %v524_v15 = vmul.f32 %v514_v53, %v2037_v16  ;;  %v525_v8 = vmul.f32 %v514_v53, %v2044_v19  ;;  %v526_v9 = vmul.f32 %v514_v53, %v2051_v22 }
 0x1de   : > { %v527_v11 = vmul.f32 %v514_v53, %v2058_v25  ;;  %v528_v14 = vmul.f32 %v514_v53, %v2065_v28  ;;  %v529_v0 = vmul.f32 %v514_v53, %v2072_v31  ;;  %v530_v26 = vmul.f32 %v514_v53, %v2079_v34 }
 0x1df   : > { %v531_v10 = vmul.f32 %v514_v53, %v2086_v37  ;;  %v532_v13 = vmul.f32 %v514_v53, %v2093_v40  ;;  %v533_v16 = vmul.f32 %v514_v53, %v2100_v43  ;;  %v534_v19 = vmul.f32 %v514_v53, %v2107_v46 }
 0x1e0   : > { %v535_v22 = vmul.f32 %v514_v53, %v2114_v49  ;;  %v536_v25 = vmul.f32 %v514_v53, %v2121_v52  ;;  %v537_v28 = vmul.f32 %v514_v53, %v2128_v55  ;;  %v538_v31 = vmul.f32 %v514_v53, %v2135_v58  ;;  %v2241_v49 = vld [vmem:[%s3696_s3] ss:$0 sm:$0xff] }
 0x1e1   : > { %v539_v17 = vmul.f32 %v514_v53, %v2142_v62  ;;  %v540_v34 = vmul.f32 %v514_v53, %v2149_v6  ;;  %v541_v37 = vmul.f32 %v514_v53, %v2156_v12  ;;  %v542_v40 = vmul.f32 %v514_v53, %v2163_v18 }
 0x1e2   : > { %v543_v43 = vmul.f32 %v514_v53, %v2170_v23  ;;  %v544_v46 = vmul.f32 %v514_v53, %v2177_v27  ;;  %v551_v1 = vmul.f32 %v1448_v2, %v515_v54  ;;  %v545_v52 = vmul.f32 %v514_v53, %v2184_v32 }
 0x1e3   : > { %v546_v55 = vmul.f32 %v514_v53, %v2191_v36  ;;  %v552_v58 = vmul.f32 %v1448_v2, %v516_v56  ;;  %v553_v62 = vmul.f32 %v1448_v2, %v517_v57  ;;  %v554_v6 = vmul.f32 %v1448_v2, %v518_v59 }
 0x1e4   : > { %v555_v12 = vmul.f32 %v1448_v2, %v519_v60  ;;  %v556_v45 = vmul.f32 %v1448_v2, %v520_v61  ;;  %v557_v18 = vmul.f32 %v1448_v2, %v521_v41  ;;  %v558_v5 = vmul.f32 %v1448_v2, %v522_v63 }
 0x1e5   : > { %v559_v23 = vmul.f32 %v1448_v2, %v523_v4  ;;  %v560_v3 = vmul.f32 %v1448_v2, %v524_v15  ;;  %v561_v27 = vmul.f32 %v1448_v2, %v525_v8  ;;  %v562_v20 = vmul.f32 %v1448_v2, %v526_v9 }
 0x1e6   : > { %v563_v21 = vmul.f32 %v1448_v2, %v527_v11  ;;  %v564_v24 = vmul.f32 %v1448_v2, %v528_v14  ;;  %v2246_v7 = vadd.f32 %v2241_v49, %v551_v1  ;;  %v565_v29 = vmul.f32 %v1448_v2, %v529_v0 }
 0x1e7   : > { %v566_v32 = vmul.f32 %v1448_v2, %v530_v26  ;;  %v567_v30 = vmul.f32 %v1448_v2, %v531_v10  ;;  %v2249_v36 = vadd.f32 %v2241_v49, %v552_v58  ;;  %v568_v33 = vmul.f32 %v1448_v2, %v532_v13 }
 0x1e8   : > { %3746 = vst [vmem:[#allocation8_spill] sm:$0xff] %v2246_v7  ;;  %v569_v35 = vmul.f32 %v1448_v2, %v533_v16  ;;  %v570_v38 = vmul.f32 %v1448_v2, %v534_v19  ;;  %v2252_v39 = vadd.f32 %v2241_v49, %v553_v62  ;;  %v571_v42 = vmul.f32 %v1448_v2, %v535_v22 }
 0x1e9   : > { %3747 = vst [vmem:[#allocation9_spill] sm:$0xff] %v2249_v36  ;;  %v572_v44 = vmul.f32 %v1448_v2, %v536_v25  ;;  %v2254_v47 = vmul.f32 %v1448_v2, %v537_v28  ;;  %v2257_v48 = vadd.f32 %v2241_v49, %v554_v6  ;;  %v2259_v50 = vmul.f32 %v1448_v2, %v538_v31 }
 0x1ea   : > { %3748 = vst [vmem:[#allocation10_spill] sm:$0xff] %v2252_v39  ;;  %v2261_v51 = vmul.f32 %v1448_v2, %v539_v17  ;;  %v2264_v53 = vadd.f32 %v2241_v49, %v555_v12  ;;  %v619_v54 = vsub.f32 0.0, %v2246_v7  ;;  %v2267_v56 = vmul.f32 %v1448_v2, %v540_v34 }
 0x1eb   : > { %3749 = vst [vmem:[#allocation11_spill] sm:$0xff] %v2257_v48  ;;  %v2269_v57 = vmul.f32 %v1448_v2, %v541_v37  ;;  %v2272_v59 = vadd.f32 %v2241_v49, %v556_v45  ;;  %v620_v60 = vsub.f32 0.0, %v2249_v36  ;;  %v2275_v61 = vmul.f32 %v1448_v2, %v542_v40 }
 0x1ec   : > { %3750 = vst [vmem:[#allocation12_spill] sm:$0xff] %v2264_v53  ;;  %v2277_v41 = vmul.f32 %v1448_v2, %v543_v43  ;;  %v2280_v63 = vadd.f32 %v2241_v49, %v557_v18  ;;  %v621_v4 = vsub.f32 0.0, %v2252_v39  ;;  %v2283_v15 = vmul.f32 %v1448_v2, %v544_v46 }
 0x1ed   : > { %3751 = vst [vmem:[#allocation13_spill] sm:$0xff] %v2272_v59  ;;  %v2285_v8 = vmul.f32 %v1448_v2, %v545_v52  ;;  %v2288_v9 = vadd.f32 %v2241_v49, %v558_v5  ;;  %v622_v11 = vsub.f32 0.0, %v2257_v48  ;;  %v2291_v14 = vmul.f32 %v1448_v2, %v546_v55 }
 0x1ee   : > { %3752 = vst [vmem:[#allocation14_spill] sm:$0xff] %v2280_v63  ;;  %v2294_v0 = vadd.f32 %v2241_v49, %v559_v23  ;;  %v623_v26 = vsub.f32 0.0, %v2264_v53  ;;  %v651_v10 = vmul.f32 1.442695, %v619_v54  ;;  %v2298_v13 = vadd.f32 %v2241_v49, %v560_v3 }
 0x1ef   : > { %3753 = vst [vmem:[#allocation15_spill] sm:$0xff] %v2288_v9  ;;  %v2301_v16 = vadd.f32 %v2241_v49, %v561_v27  ;;  %v624_v19 = vsub.f32 0.0, %v2272_v59  ;;  %v653_v22 = vmul.f32 1.442695, %v620_v60  ;;  %v2305_v25 = vadd.f32 %v2241_v49, %v562_v20 }
 0x1f0   : > { %3754 = vst [vmem:[#allocation16_spill] sm:$0xff] %v2294_v0  ;;  %v2308_v2 = vadd.f32 %v2241_v49, %v563_v21  ;;  %v625_v28 = vsub.f32 0.0, %v2280_v63  ;;  %v655_v31 = vmul.f32 1.442695, %v621_v4  ;;  %v2312_v17 = vadd.f32 %v2241_v49, %v564_v24 }
 0x1f1   : > { %3755 = vst [vmem:[#allocation17_spill] sm:$0xff] %v2298_v13  ;;  %v2315_v34 = vadd.f32 %v2241_v49, %v565_v29  ;;  %v626_v37 = vsub.f32 0.0, %v2288_v9  ;;  %v657_v40 = vmul.f32 1.442695, %v622_v11  ;;  %v2319_v43 = vadd.f32 %v2241_v49, %v566_v32 }
 0x1f2   : > { %3756 = vst [vmem:[#allocation18_spill] sm:$0xff] %v2301_v16  ;;  %v627_v46 = vsub.f32 0.0, %v2294_v0  ;;  %1452 = vpow2.f32 %v651_v10  ;;  %v659_v1 = vmul.f32 1.442695, %v623_v26  ;;  %v2323_v52 = vadd.f32 %v2241_v49, %v567_v30 }
 0x1f3   : > { %3757 = vst [vmem:[#allocation19_spill] sm:$0xff] %v2305_v25  ;;  %v628_v55 = vsub.f32 0.0, %v2298_v13  ;;  %1454 = vpow2.f32 %v653_v22  ;;  %v661_v58 = vmul.f32 1.442695, %v624_v19  ;;  %v2327_v62 = vadd.f32 %v2241_v49, %v568_v33 }
 0x1f4   : > { %3758 = vst [vmem:[#allocation20_spill] sm:$0xff] %v2308_v2  ;;  %v629_v6 = vsub.f32 0.0, %v2301_v16  ;;  %1456 = vpow2.f32 %v655_v31  ;;  %v663_v12 = vmul.f32 1.442695, %v625_v28  ;;  %v2331_v45 = vadd.f32 %v2241_v49, %v569_v35 }
 0x1f5   : > { %3759 = vst [vmem:[#allocation21_spill] sm:$0xff] %v2312_v17  ;;  %v630_v18 = vsub.f32 0.0, %v2305_v25  ;;  %1458 = vpow2.f32 %v657_v40  ;;  %v665_v5 = vmul.f32 1.442695, %v626_v37  ;;  %v2335_v23 = vadd.f32 %v2241_v49, %v570_v38 }
 0x1f6   : > { %3760 = vst [vmem:[#allocation22_spill] sm:$0xff] %v2315_v34  ;;  %v631_v3 = vsub.f32 0.0, %v2308_v2  ;;  %1460 = vpow2.f32 %v659_v1  ;;  %v667_v27 = vmul.f32 1.442695, %v627_v46  ;;  %v2339_v20 = vadd.f32 %v2241_v49, %v571_v42 }
 0x1f7   : > { %3761 = vst [vmem:[#allocation23_spill] sm:$0xff] %v2319_v43  ;;  %v632_v21 = vsub.f32 0.0, %v2312_v17  ;;  %1462 = vpow2.f32 %v661_v58  ;;  %v669_v24 = vmul.f32 1.442695, %v628_v55  ;;  %v2345_v32 = vadd.f32 %v2241_v49, %v572_v44 }
 0x1f8   : > { %3762 = vst [vmem:[#allocation24_spill] sm:$0xff] %v2323_v52  ;;  %v2342_v29 = vpop.eup %1452  ;;  %v633_v30 = vsub.f32 0.0, %v2315_v34  ;;  %1464 = vpow2.f32 %v663_v12  ;;  %v671_v33 = vmul.f32 1.442695, %v629_v6  ;;  %v2352_v38 = vadd.f32 %v2241_v49, %v2254_v47 }
 0x1f9   : > { %3763 = vst [vmem:[#allocation25_spill] sm:$0xff] %v2327_v62  ;;  %v2348_v35 = vpop.eup %1454  ;;  %v634_v42 = vsub.f32 0.0, %v2319_v43  ;;  %1466 = vpow2.f32 %v665_v5  ;;  %v673_v54 = vmul.f32 1.442695, %v630_v18  ;;  %v2359_v44 = vadd.f32 %v2241_v49, %v2259_v50 }
 0x1fa   : > { %3764 = vst [vmem:[#allocation26_spill] sm:$0xff] %v2331_v45  ;;  %v2355_v60 = vpop.eup %1456  ;;  %v635_v4 = vsub.f32 0.0, %v2323_v52  ;;  %1468 = vpow2.f32 %v667_v27  ;;  %v675_v11 = vmul.f32 1.442695, %v631_v3  ;;  %v2366_v47 = vadd.f32 %v2241_v49, %v2261_v51 }
 0x1fb   : > { %3765 = vst [vmem:[#allocation27_spill] sm:$0xff] %v2335_v23  ;;  %v2362_v26 = vpop.eup %1458  ;;  %v636_v10 = vsub.f32 0.0, %v2327_v62  ;;  %1470 = vpow2.f32 %v669_v24  ;;  %v677_v19 = vmul.f32 1.442695, %v632_v21  ;;  %v2373_v50 = vadd.f32 %v2241_v49, %v2267_v56 }
 0x1fc   : > { %3766 = vst [vmem:[#allocation28_spill] sm:$0xff] %v2339_v20  ;;  %v2369_v22 = vpop.eup %1460  ;;  %v637_v28 = vsub.f32 0.0, %v2331_v45  ;;  %1472 = vpow2.f32 %v671_v33  ;;  %v679_v31 = vmul.f32 1.442695, %v633_v30  ;;  %v2380_v51 = vadd.f32 %v2241_v49, %v2269_v57 }
 0x1fd   : > { %3767 = vst [vmem:[#allocation29_spill] sm:$0xff] %v2345_v32  ;;  %v2376_v37 = vpop.eup %1462  ;;  %v638_v40 = vsub.f32 0.0, %v2335_v23  ;;  %1474 = vpow2.f32 %v673_v54  ;;  %v681_v46 = vmul.f32 1.442695, %v634_v42  ;;  %v2387_v56 = vadd.f32 %v2241_v49, %v2275_v61 }
 0x1fe   : > { %3768 = vst [vmem:[#allocation30_spill] sm:$0xff] %v2352_v38  ;;  %v2383_v1 = vpop.eup %1464  ;;  %v639_v55 = vsub.f32 0.0, %v2339_v20  ;;  %1476 = vpow2.f32 %v675_v11  ;;  %v683_v58 = vmul.f32 1.442695, %v635_v4  ;;  %v2394_v57 = vadd.f32 %v2241_v49, %v2277_v41 }
 0x1ff   : > { %3769 = vst [vmem:[#allocation31_spill] sm:$0xff] %v2359_v44  ;;  %v2390_v6 = vpop.eup %1466  ;;  %v640_v12 = vsub.f32 0.0, %v2345_v32  ;;  %1478 = vpow2.f32 %v677_v19  ;;  %v685_v18 = vmul.f32 1.442695, %v636_v10  ;;  %v2401_v61 = vadd.f32 %v2241_v49, %v2283_v15 }
 0x200   : > { %3770 = vst [vmem:[#allocation32_spill] sm:$0xff] %v2366_v47  ;;  %v2397_v5 = vpop.eup %1468  ;;  %v641_v3 = vsub.f32 0.0, %v2352_v38  ;;  %1480 = vpow2.f32 %v679_v31  ;;  %v687_v27 = vmul.f32 1.442695, %v637_v28  ;;  %v2408_v41 = vadd.f32 %v2241_v49, %v2285_v8 }
 0x201   : > { %3771 = vst [vmem:[#allocation33_spill] sm:$0xff] %v2373_v50  ;;  %v2404_v21 = vpop.eup %1470  ;;  %v642_v24 = vsub.f32 0.0, %v2359_v44  ;;  %1482 = vpow2.f32 %v681_v46  ;;  %v689_v30 = vmul.f32 1.442695, %v638_v40  ;;  %v2415_v15 = vadd.f32 %v2241_v49, %v2291_v14 }
 0x202   : > { %3772 = vst [vmem:[#allocation34_spill] sm:$0xff] %v2380_v51  ;;  %v2411_v33 = vpop.eup %1472  ;;  %v643_v42 = vsub.f32 0.0, %v2366_v47  ;;  %1484 = vpow2.f32 %v683_v58  ;;  %v691_v54 = vmul.f32 1.442695, %v639_v55  ;;  %v644_v11 = vsub.f32 0.0, %v2373_v50 }
 0x203   : > { %3773 = vst [vmem:[#allocation35_spill] sm:$0xff] %v2387_v56  ;;  %v2418_v4 = vpop.eup %1474  ;;  %v645_v8 = vsub.f32 0.0, %v2380_v51  ;;  %1486 = vpow2.f32 %v685_v18  ;;  %v693_v10 = vmul.f32 1.442695, %v640_v12  ;;  %v646_v28 = vsub.f32 0.0, %v2387_v56 }
 0x204   : > { %3774 = vst [vmem:[#allocation36_spill] sm:$0xff] %v2394_v57  ;;  %v2422_v19 = vpop.eup %1476  ;;  %v647_v31 = vsub.f32 0.0, %v2394_v57  ;;  %1488 = vpow2.f32 %v687_v27  ;;  %v695_v49 = vmul.f32 1.442695, %v641_v3  ;;  %v648_v40 = vsub.f32 0.0, %v2401_v61 }
 0x205   : > { %3775 = vst [vmem:[#allocation37_spill] sm:$0xff] %v2401_v61  ;;  %v2426_v14 = vpop.eup %1478  ;;  %1490 = vpow2.f32 %v689_v30  ;;  %v697_v46 = vmul.f32 1.442695, %v642_v24  ;;  %v2430_v55 = vadd.f32 1.0, %v2342_v29  ;;  %v649_v12 = vsub.f32 0.0, %v2408_v41 }
 0x206   : > { %3776 = vst [vmem:[#allocation38_spill] sm:$0xff] %v2408_v41  ;;  %v2432_v58 = vpop.eup %1480  ;;  %1492 = vpow2.f32 %v691_v54  ;;  %v699_v18 = vmul.f32 1.442695, %v643_v42  ;;  %v2436_v56 = vadd.f32 1.0, %v2348_v35  ;;  %v650_v3 = vsub.f32 0.0, %v2415_v15 }
 0x207   : > { %3777 = vst [vmem:[#allocation39_spill] sm:$0xff] %v2415_v15  ;;  %v1483_v27 = vpop.eup %1482  ;;  %1494 = vpow2.f32 %v693_v10  ;;  %v701_v57 = vmul.f32 1.442695, %v644_v11  ;;  %v703_v24 = vmul.f32 1.442695, %v645_v8  ;;  %v2442_v54 = vadd.f32 1.0, %v2355_v60 }
 0x208   : > { %v1485_v61 = vpop.eup %1484  ;;  %1496 = vpow2.f32 %v695_v49  ;;  %v705_v30 = vmul.f32 1.442695, %v646_v28  ;;  %v707_v29 = vmul.f32 1.442695, %v647_v31  ;;  %v2439_v50 = vmul.f32 1.442695, %v648_v40 }
 0x209   : > { %v1487_v51 = vpop.eup %1486  ;;  %1498 = vpow2.f32 %v697_v46  ;;  %v758_v35 = vand.u32 2147483648, %v2430_v55  ;;  %v2445_v41 = vmul.f32 1.442695, %v649_v12  ;;  %v2448_v11 = vadd.f32 1.0, %v2362_v26 }
 0x20a   : > { %v1489_v42 = vpop.eup %1488  ;;  %1500 = vpow2.f32 %v699_v18  ;;  %v773_v8 = vand.u32 2147483648, %v2436_v56  ;;  %v2451_v28 = vmul.f32 1.442695, %v650_v3  ;;  %v2454_v31 = vadd.f32 1.0, %v2369_v22 }
 0x20b   : > { %v1491_v10 = vpop.eup %1490  ;;  %1502 = vpow2.f32 %v701_v57  ;;  %v2458_v40 = vadd.f32 1.0, %v2376_v37  ;;  %v2461_v46 = vadd.f32 1.0, %v2383_v1  ;;  %v2465_v57 = vadd.f32 1.0, %v2390_v6 }
 0x20c   : > { %v1493_v49 = vpop.eup %1492  ;;  %1504 = vpow2.f32 %v703_v24  ;;  %v2467_v18 = vor.u32 1.1754944e-38, %v758_v35  ;;  %v788_v22 = vand.u32 2147483648, %v2442_v54  ;;  %v2471_v24 = vadd.f32 1.0, %v2397_v5 }
 0x20d   : > { %v1495_v12 = vpop.eup %1494  ;;  %1506 = vpow2.f32 %v705_v30  ;;  %v2474_v37 = vor.u32 1.1754944e-38, %v773_v8  ;;  %v803_v1 = vand.u32 2147483648, %v2448_v11  ;;  %v2478_v30 = vadd.f32 1.0, %v2404_v21 }
 0x20e   : > { %v1497_v3 = vpop.eup %1496  ;;  %1508 = vrcp.f32 %v2430_v55  ;;  %v2481_v6 = vadd.f32 1.0, %v2411_v33  ;;  %v2486_v5 = vadd.f32 1.0, %v2418_v4  ;;  %v818_v15 = vand.u32 2147483648, %v2454_v31 }
 0x20f   : > { %v1499_v26 = vpop.eup %1498  ;;  %1510 = vrcp.f32 %v2436_v56  ;;  %v2492_v21 = vadd.f32 1.0, %v2422_v19  ;;  %v2494_v33 = vor.u32 1.1754944e-38, %v788_v22  ;;  %v833_v44 = vand.u32 2147483648, %v2458_v40 }
 0x210   : > { %v1501_v60 = vpop.eup %1500  ;;  %1512 = vrcp.f32 %v2442_v54  ;;  %v2498_v38 = vadd.f32 1.0, %v2426_v14  ;;  %v2501_v4 = vor.u32 1.1754944e-38, %v803_v1  ;;  %v2507_v19 = vadd.f32 1.0, %v1483_v27 }
 0x211   : > { %v1503_v47 = vpop.eup %1502  ;;  %1514 = vpow2.f32 %v707_v29  ;;  %v2505_v29 = vadd.f32 1.0, %v2432_v58  ;;  %v2513_v14 = vadd.f32 1.0, %v1485_v61  ;;  %v2515_v23 = vor.u32 1.1754944e-38, %v818_v15 }
 0x212   : > { %v1505_v35 = vpop.eup %1504  ;;  %1516 = vrcp.f32 %v2448_v11  ;;  %v848_v1 = vand.u32 2147483648, %v2461_v46  ;;  %v2521_v58 = vadd.f32 1.0, %v1487_v51  ;;  %v2523_v27 = vadd.f32 1.0, %v1489_v42 }
 0x213   : > { %v1507_v32 = vpop.eup %1506  ;;  %1518 = vrcp.f32 %v2454_v31  ;;  %v2525_v45 = vor.u32 1.1754944e-38, %v833_v44  ;;  %v2531_v61 = vadd.f32 1.0, %v1491_v10  ;;  %v863_v62 = vand.u32 2147483648, %v2465_v57 }
 0x214   : > { %v2511_v20 = vpop.eup %1508  ;;  %1520 = vrcp.f32 %v2458_v40  ;;  %v2536_v51 = vadd.f32 1.0, %v1493_v49  ;;  %v2538_v42 = vadd.f32 1.0, %v1495_v12  ;;  %v2548_v15 = vor.u32 1.1754944e-38, %v848_v1 }
 0x215   : > { %v2519_v8 = vpop.eup %1510  ;;  %1522 = vrcp.f32 %v2461_v46  ;;  %v878_v12 = vand.u32 2147483648, %v2471_v24  ;;  %v2560_v44 = vadd.f32 1.0, %v1499_v26  ;;  %v2562_v17 = vor.u32 1.1754944e-38, %v863_v62 }
 0x216   : > { %v2528_v22 = vpop.eup %1512  ;;  %1524 = vpow2.f32 %v2439_v50  ;;  %3778 = vst [vmem:[#allocation40_spill] sm:$0xff] %v2538_v42  ;;  %v748_v50 = vmul.f32 %v2511_v20, %v2430_v55  ;;  %v763_v10 = vmul.f32 %v2519_v8, %v2436_v56  ;;  %v2570_v25 = vadd.f32 1.0, %v1503_v47 }
 0x217   : > { %v1515_v52 = vpop.eup %1514  ;;  %1526 = vpow2.f32 %v2445_v41  ;;  %v2552_v41 = vadd.f32 1.0, %v1497_v3  ;;  %v778_v49 = vmul.f32 %v2528_v22, %v2442_v54  ;;  %3780 = vst [vmem:[#allocation42_spill] sm:$0xff] %v2560_v44  ;;  %v2568_v3 = vadd.f32 1.0, %v1501_v60 }
 0x218   : > { %v2541_v43 = vpop.eup %1516  ;;  %1528 = vpow2.f32 %v2451_v28  ;;  %3782 = vst [vmem:[#allocation44_spill] sm:$0xff] %v2570_v25  ;;  %v893_v16 = vand.u32 2147483648, %v2478_v30  ;;  %v2574_v0 = vadd.f32 1.0, %v1505_v35  ;;  %v749_v26 = vsub.f32 1.0, %v748_v50 }
 0x219   : > { %v2550_v34 = vpop.eup %1518  ;;  %3779 = vst [vmem:[#allocation41_spill] sm:$0xff] %v2552_v41  ;;  %1530 = vrcp.f32 %v2465_v57  ;;  %v764_v62 = vsub.f32 1.0, %v763_v10  ;;  %v779_v59 = vsub.f32 1.0, %v778_v49  ;;  %v793_v1 = vmul.f32 %v2541_v43, %v2448_v11 }
 0x21a   : > { %v2558_v28 = vpop.eup %1520  ;;  %1532 = vrcp.f32 %v2471_v24  ;;  %3781 = vst [vmem:[#allocation43_spill] sm:$0xff] %v2568_v3  ;;  %v808_v47 = vmul.f32 %v2550_v34, %v2454_v31  ;;  %v2581_v60 = vor.u32 1.1754944e-38, %v878_v12  ;;  %v2585_v48 = vadd.f32 1.0, %v1507_v32 }
 0x21b   : > { %v2566_v2 = vpop.eup %1522  ;;  %1534 = vrcp.f32 %v2478_v30  ;;  %3783 = vst [vmem:[#allocation45_spill] sm:$0xff] %v2574_v0  ;;  %v2587_v35 = vadd.f32 1.0, %v1515_v52  ;;  %vm752_vm4 = vweird.f32 %v2430_v55  ;;  %v823_v50 = vmul.f32 %v2558_v28, %v2458_v40 }
 0x21c   : > { %v1525_v13 = vpop.eup %1524  ;;  %3784 = vst [vmem:[#allocation46_spill] sm:$0xff] %v2585_v48  ;;  %v838_v10 = vmul.f32 %v2566_v2, %v2461_v46  ;;  %vm767_vm5 = vweird.f32 %v2436_v56  ;;  %v2599_v12 = vor.u32 1.1754944e-38, %v893_v16  ;;  %1536 = vrcp.f32 %v2481_v6 }
 0x21d   : > { %v1527_v63 = vpop.eup %1526  ;;  %3785 = vst [vmem:[#allocation47_spill] sm:$0xff] %v2587_v35  ;;  %v2596_v9 = vadd.f32 1.0, %v1525_v13  ;;  %v750_v36 = vmul.f32 %v2511_v20, %v749_v26  ;;  %v765_v7 = vmul.f32 %v2519_v8, %v764_v62  ;;  %vm782_vm6 = vweird.f32 %v2442_v54 }
 0x21e   : > { %v2583_v53 = vpop.eup %1528  ;;  %v2605_v39 = vadd.f32 1.0, %v1527_v63  ;;  %v780_v16 = vmul.f32 %v2528_v22, %v779_v59  ;;  %v794_v35 = vsub.f32 1.0, %v793_v1  ;;  %vm797_vm7 = vweird.f32 %v2448_v11 }
 0x21f   : > { %v2594_v49 = vpop.eup %1530  ;;  %3786 = vst [vmem:[#allocation48_spill] sm:$0xff] %v2596_v9  ;;  %v809_v52 = vsub.f32 1.0, %v808_v47  ;;  %vm812_vm8 = vweird.f32 %v2454_v31  ;;  %v824_v63 = vsub.f32 1.0, %v823_v50  ;;  %v839_v26 = vsub.f32 1.0, %v838_v10 }
 0x220   : > { %v2603_v32 = vpop.eup %1532  ;;  %3787 = vst [vmem:[#allocation49_spill] sm:$0xff] %v2605_v39  ;;  %v853_v62 = vmul.f32 %v2594_v49, %v2465_v57  ;;  %v923_v39 = vand.u32 2147483648, %v2486_v5  ;;  %vm753_vm9 = vweird.f32 %v2511_v20  ;;  %v3788_v13 = vand.u32 2147483647, %v2430_v55 }
 0x221   : > { %v2611_v9 = vpop.eup %1534  ;;  %vm768_vm11 = vweird.f32 %v2519_v8  ;;  %v3791_v1 = vand.u32 2147483647, %v2436_v56  ;;  %vm783_vm13 = vweird.f32 %v2528_v22  ;;  %v868_v50 = vmul.f32 %v2603_v32, %v2471_v24  ;;  %vm2663_vm3 = vmor %vm752_vm4, %vm753_vm9 }
 0x222   : > { %vm2623_vm10 = vcmp.eq.f32.partialorder %v3788_v13, 8.507059e+37  ;;  %v751_v10 = vadd.f32 %v2511_v20, %v750_v36  ;;  %v766_v13 = vadd.f32 %v2519_v8, %v765_v7  ;;  %v3794_v48 = vand.u32 2147483647, %v2442_v54  ;;  %v2650_v25 = vpop.eup %1536  ;;  %vm2677_vm14 = vmor %vm767_vm5, %vm768_vm11 }
 0x223   : > { %vm2630_vm12 = vcmp.eq.f32.partialorder %v3791_v1, 8.507059e+37  ;;  %vm798_vm1 = vweird.f32 %v2541_v43  ;;  %v883_v1 = vmul.f32 %v2611_v9, %v2478_v30  ;;  %v781_v3 = vadd.f32 %v2528_v22, %v780_v16  ;;  %vm2704_vm5 = vmor %vm782_vm6, %vm783_vm13 }
 0x224   : > { %vm2642_vm15 = vcmp.eq.f32.partialorder %v3794_v48, 8.507059e+37  ;;  %v795_v36 = vmul.f32 %v2541_v43, %v794_v35  ;;  %v810_v7 = vmul.f32 %v2550_v34, %v809_v52  ;;  %1538 = vrcp.f32 %v2486_v5  ;;  %vm2725_vm6 = vmor %vm797_vm7, %vm798_vm1 }
 0x225   : > { %v825_v48 = vmul.f32 %v2558_v28, %v824_v63  ;;  %v840_v44 = vmul.f32 %v2566_v2, %v839_v26  ;;  %v854_v41 = vsub.f32 1.0, %v853_v62  ;;  %1540 = vrcp.f32 %v2492_v21 }
 0x226   : > { %vm813_vm0 = vweird.f32 %v2550_v34  ;;  %v869_v35 = vsub.f32 1.0, %v868_v50  ;;  %1542 = vrcp.f32 %v2498_v38  ;;  %v755_v52 = vsel %vm2663_vm3, %v2511_v20, %v751_v10 }
 0x227   : > { %v3801_v16 = vand.u32 2147483647, %v2448_v11  ;;  %v3804_v26 = vand.u32 2147483647, %v2454_v31  ;;  %vm843_vm3 = vweird.f32 %v2566_v2  ;;  %vm857_vm2 = vweird.f32 %v2465_v57  ;;  %vm2748_vm7 = vmor %vm812_vm8, %vm813_vm0 }
 0x228   : > { %v884_v20 = vsub.f32 1.0, %v883_v1  ;;  %v898_v56 = vmul.f32 %v2650_v25, %v2481_v6  ;;  %v770_v42 = vsel %vm2677_vm14, %v2519_v8, %v766_v13  ;;  %v796_v10 = vadd.f32 %v2541_v43, %v795_v36 }
 0x229   : > { %vm2683_vm4 = vcmp.eq.f32.partialorder %v3801_v16, 8.507059e+37  ;;  %vm2689_vm9 = vcmp.eq.f32.partialorder %v3804_v26, 8.507059e+37  ;;  %v811_v16 = vadd.f32 %v2550_v34, %v810_v7  ;;  %v3809_v1 = vand.u32 2147483647, %v2458_v40 }
 0x22a   : > { %vm872_vm14 = vweird.f32 %v2471_v24  ;;  %1544 = vrcp.f32 %v2505_v29  ;;  %v785_v54 = vsel %vm2704_vm5, %v2528_v22, %v781_v3  ;;  %v826_v13 = vadd.f32 %v2558_v28, %v825_v48  ;;  %v2739_v3 = vpop.eup %1538 }
 0x22b   : > { %vm2712_vm11 = vcmp.eq.f32.partialorder %v3809_v1, 8.507059e+37  ;;  %v841_v36 = vadd.f32 %v2566_v2, %v840_v44  ;;  %v3814_v7 = vand.u32 2147483647, %v2461_v46  ;;  %v855_v22 = vmul.f32 %v2594_v49, %v854_v41 }
 0x22c   : > { %v2742_v11 = vadd.f32 1.0, %v2583_v53  ;;  %v870_v48 = vmul.f32 %v2603_v32, %v869_v35  ;;  %v3819_v50 = vand.u32 2147483648, %v2481_v6  ;;  %v2757_v1 = vor.u32 1.1754944e-38, %v923_v39 }
 0x22d   : > { %vm2733_vm13 = vcmp.eq.f32.partialorder %v3814_v7, 8.507059e+37  ;;  %v2759_v7 = vpop.eup %1540  ;;  %v2764_v53 = vsel %vm2623_vm10, %v2467_v18, %v755_v52  ;;  %v2769_v31 = vsel %vm2630_vm12, %v2474_v37, %v770_v42  ;;  %vm3820_vm0 = vweird.f32 %v2558_v28 }
 0x22e   : > { %v2755_v41 = vor.u32 1.1754944e-38, %v3819_v50  ;;  %vm3821_vm8 = vweird.f32 %v2458_v40  ;;  %v3824_v39 = vand.u32 2147483647, %v2465_v57  ;;  %v885_v18 = vmul.f32 %v2611_v9, %v884_v20  ;;  %v2786_v47 = vpop.eup %1542 }
 0x22f   : > { %vm2775_vm1 = vmor %vm3821_vm8, %vm3820_vm0  ;;  %v899_v59 = vsub.f32 1.0, %v898_v56  ;;  %v2791_v37 = vsel %vm2642_vm15, %v2494_v33, %v785_v54  ;;  %v800_v40 = vsel %vm2725_vm6, %v2541_v43, %v796_v10  ;;  %v815_v52 = vsel %vm2748_vm7, %v2550_v34, %v811_v16 }
 0x230   : > { %vm2781_vm5 = vcmp.eq.f32.partialorder %v3824_v39, 8.507059e+37  ;;  %vm3827_vm10 = vweird.f32 %v2461_v46  ;;  %vm858_vm0 = vweird.f32 %v2594_v49  ;;  %v830_v0 = vsel %vm2775_vm1, %v2558_v28, %v826_v13 }
 0x231   : > { %vm2803_vm12 = vmor %vm3827_vm10, %vm843_vm3  ;;  %v856_v34 = vadd.f32 %v2594_v49, %v855_v22  ;;  %v3830_v33 = vand.u32 2147483647, %v2471_v24  ;;  %v3833_v56 = vand.u32 2147483647, %v2478_v30  ;;  %vm902_vm6 = vweird.f32 %v2481_v6 }
 0x232   : > { %v845_v43 = vsel %vm2803_vm12, %v2566_v2, %v841_v36  ;;  %v913_v28 = vmul.f32 %v2739_v3, %v2486_v5  ;;  %v2830_v2 = vpop.eup %1544  ;;  %v871_v10 = vadd.f32 %v2603_v32, %v870_v48  ;;  %vm873_vm7 = vweird.f32 %v2603_v32  ;;  %vm2856_vm1 = vmor %vm857_vm2, %vm858_vm0 }
 0x233   : > { %vm2817_vm15 = vcmp.eq.f32.partialorder %v3830_v33, 8.507059e+37  ;;  %vm2823_vm3 = vcmp.eq.f32.partialorder %v3833_v56, 8.507059e+37  ;;  %v928_v16 = vmul.f32 %v2759_v7, %v2492_v21  ;;  %1546 = vrcp.f32 %v2507_v19 }
 0x234   : > { %v886_v54 = vadd.f32 %v2611_v9, %v885_v18  ;;  %vm888_vm8 = vweird.f32 %v2611_v9  ;;  %v900_v8 = vmul.f32 %v2650_v25, %v899_v59  ;;  %v943_v13 = vmul.f32 %v2786_v47, %v2498_v38 }
 0x235   : > { %v2845_v36 = vsel %vm2683_vm4, %v2501_v4, %v800_v40  ;;  %v2850_v22 = vsel %vm2689_vm9, %v2515_v23, %v815_v52  ;;  %v938_v48 = vand.u32 2147483648, %v2492_v21  ;;  %1548 = vrcp.f32 %v2513_v14  ;;  %vm2872_vm4 = vmor %vm872_vm14, %vm873_vm7 }
 0x236   : > { %v2865_v4 = vsel %vm2712_vm11, %v2525_v45, %v830_v0  ;;  %v860_v23 = vsel %vm2856_vm1, %v2594_v49, %v856_v34  ;;  %v3840_v63 = vand.u32 2147483647, %v2481_v6  ;;  %v914_v35 = vsub.f32 1.0, %v913_v28 }
 0x237   : > { %v958_v45 = vmul.f32 %v2830_v2, %v2505_v29  ;;  %v2887_v49 = vsel %vm2733_vm13, %v2548_v15, %v845_v43  ;;  %v875_v24 = vsel %vm2872_vm4, %v2603_v32, %v871_v10  ;;  %vm3843_vm9 = vweird.f32 %v2478_v30 }
 0x238   : > { %vm2878_vm2 = vcmp.eq.f32.partialorder %v3840_v63, 8.507059e+37  ;;  %vm2896_vm11 = vmor %vm3843_vm9, %vm888_vm8  ;;  %vm903_vm14 = vweird.f32 %v2650_v25  ;;  %v929_v39 = vsub.f32 1.0, %v928_v16  ;;  %v901_v55 = vadd.f32 %v2650_v25, %v900_v8 }
 0x239   : > { %v890_v15 = vsel %vm2896_vm11, %v2611_v9, %v886_v54  ;;  %vm917_vm13 = vweird.f32 %v2486_v5  ;;  %v944_v32 = vsub.f32 1.0, %v943_v13  ;;  %1550 = vrcp.f32 %v2521_v58  ;;  %v2907_v18 = vpop.eup %1546 }
 0x23a   : > { %v2912_v30 = vsel %vm2781_vm5, %v2562_v17, %v860_v23  ;;  %vm932_vm10 = vweird.f32 %v2492_v21  ;;  %v936_v59 = vand.u32 2147483647, %v2492_v21  ;;  %v2916_v40 = vor.u32 1.1754944e-38, %v938_v48  ;;  %vm2938_vm5 = vmor %vm902_vm6, %vm903_vm14 }
 0x23b   : > { %v915_v9 = vmul.f32 %v2739_v3, %v914_v35  ;;  %vm947_vm12 = vweird.f32 %v2498_v38  ;;  %v951_v52 = vand.u32 2147483647, %v2498_v38  ;;  %v953_v20 = vand.u32 2147483648, %v2498_v38  ;;  %v2922_v43 = vpop.eup %1548 }
 0x23c   : > { %v959_v0 = vsub.f32 1.0, %v958_v45  ;;  %v2927_v17 = vsel %vm2817_vm15, %v2581_v60, %v875_v24  ;;  %v2932_v50 = vsel %vm2823_vm3, %v2599_v12, %v890_v15  ;;  %v930_v33 = vmul.f32 %v2759_v7, %v929_v39 }
 0x23d   : > { %1552 = vrcp.f32 %v2523_v27  ;;  %v905_v60 = vsel %vm2938_vm5, %v2650_v25, %v901_v55  ;;  %vm918_vm0 = vweird.f32 %v2739_v3  ;;  %v3848_v12 = vand.u32 2147483647, %v2486_v5 }
 0x23e   : > { %v945_v6 = vmul.f32 %v2786_v47, %v944_v32  ;;  %v973_v56 = vmul.f32 %v2907_v18, %v2507_v19  ;;  %vm933_vm3 = vweird.f32 %v2759_v7  ;;  %vm2958_vm6 = vcmp.eq.f32.partialorder %v936_v59, 8.507059e+37  ;;  %vm2992_vm4 = vmor %vm917_vm13, %vm918_vm0 }
 0x23f   : > { %vm2950_vm15 = vcmp.eq.f32.partialorder %v3848_v12, 8.507059e+37  ;;  %v966_v25 = vand.u32 2147483647, %v2505_v29  ;;  %v968_v28 = vand.u32 2147483648, %v2505_v29  ;;  %1554 = vrcp.f32 %v2531_v61  ;;  %v2965_v10 = vpop.eup %1550  ;;  %vm3010_vm9 = vmor %vm932_vm10, %vm933_vm3  ;;  %v3866_v12 = vld [vmem:[#allocation41_spill] sm:$0xff] }
 0x240   : > { %v916_v16 = vadd.f32 %v2739_v3, %v915_v9  ;;  %vm2968_vm7 = vcmp.eq.f32.partialorder %v951_v52, 8.507059e+37  ;;  %v954_v8 = vor.u32 1.1754944e-38, %v953_v20  ;;  %v960_v13 = vmul.f32 %v2830_v2, %v959_v0 }
 0x241   : > { %v988_v44 = vmul.f32 %v2922_v43, %v2513_v14  ;;  %v2978_v48 = vsel %vm2878_vm2, %v2755_v41, %v905_v60  ;;  %v931_v23 = vadd.f32 %v2759_v7, %v930_v33  ;;  %vm962_vm8 = vweird.f32 %v2505_v29  ;;  %v3863_v33 = vld [vmem:[#allocation40_spill] sm:$0xff] }
 0x242   : > { %v983_v57 = vand.u32 2147483648, %v2507_v19  ;;  %v946_v63 = vadd.f32 %v2786_v47, %v945_v6  ;;  %vm948_vm1 = vweird.f32 %v2786_v47  ;;  %v974_v35 = vsub.f32 1.0, %v973_v56 }
 0x243   : > { %1556 = vrcp.f32 %v2536_v51  ;;  %v2986_v45 = vpop.eup %1552  ;;  %vm2996_vm2 = vcmp.eq.f32.partialorder %v966_v25, 8.507059e+37  ;;  %v969_v24 = vor.u32 1.1754944e-38, %v968_v28  ;;  %v981_v26 = vand.u32 2147483647, %v2507_v19  ;;  %vm3026_vm13 = vmor %vm947_vm12, %vm948_vm1 }
 0x244   : > { %v1003_v39 = vmul.f32 %v2965_v10, %v2521_v58  ;;  %v920_v15 = vsel %vm2992_vm4, %v2739_v3, %v916_v16  ;;  %v961_v55 = vadd.f32 %v2830_v2, %v960_v13  ;;  %vm963_vm11 = vweird.f32 %v2830_v2 }
 0x245   : > { %vm977_vm14 = vweird.f32 %v2507_v19  ;;  %v989_v32 = vsub.f32 1.0, %v988_v44  ;;  %v3017_v59 = vpop.eup %1554  ;;  %v935_v3 = vsel %vm3010_vm9, %v2759_v7, %v931_v23  ;;  %v984_v9 = vor.u32 1.1754944e-38, %v983_v57  ;;  %vm3046_vm10 = vmor %vm962_vm8, %vm963_vm11 }
 0x246   : > { %v996_v52 = vand.u32 2147483647, %v2513_v14  ;;  %v998_v20 = vand.u32 2147483648, %v2513_v14  ;;  %v950_v0 = vsel %vm3026_vm13, %v2786_v47, %v946_v63  ;;  %v975_v34 = vmul.f32 %v2907_v18, %v974_v35 }
 0x247   : > { %v1018_v7 = vmul.f32 %v2986_v45, %v2523_v27  ;;  %1558 = vrcp.f32 %v3863_v33  ;;  %v3042_v38 = vsel %vm2950_vm15, %v2757_v1, %v920_v15  ;;  %vm992_vm12 = vweird.f32 %v2513_v14 }
 0x248   : > { %v1004_v47 = vsub.f32 1.0, %v1003_v39  ;;  %1560 = vrcp.f32 %v3866_v12  ;;  %v3057_v56 = vsel %vm2958_vm6, %v2916_v40, %v935_v3  ;;  %v965_v29 = vsel %vm3046_vm10, %v2830_v2, %v961_v55  ;;  %v3875_v3 = vld [vmem:[#allocation42_spill] sm:$0xff] }
 0x249   : > { %v3052_v6 = vpop.eup %1556  ;;  %vm3062_vm5 = vcmp.eq.f32.partialorder %v981_v26, 8.507059e+37  ;;  %v990_v46 = vmul.f32 %v2922_v43, %v989_v32  ;;  %v1033_v25 = vmul.f32 %v3017_v59, %v2531_v61  ;;  %v3071_v28 = vsel %vm2968_vm7, %v954_v8, %v950_v0  ;;  %v3878_v0 = vld [vmem:[#allocation43_spill] sm:$0xff] }
 0x24a   : > { %vm978_vm0 = vweird.f32 %v2907_v18  ;;  %v1011_v40 = vand.u32 2147483647, %v2521_v58  ;;  %v1013_v42 = vand.u32 2147483648, %v2521_v58  ;;  %v976_v2 = vadd.f32 %v2907_v18, %v975_v34 }
 0x24b   : > { %vm3077_vm15 = vcmp.eq.f32.partialorder %v996_v52, 8.507059e+37  ;;  %v999_v13 = vor.u32 1.1754944e-38, %v998_v20  ;;  %vm1007_vm3 = vweird.f32 %v2521_v58  ;;  %v1019_v44 = vsub.f32 1.0, %v1018_v7  ;;  %vm3102_vm8 = vmor %vm977_vm14, %vm978_vm0 }
 0x24c   : > { %v3084_v54 = vsel %vm2996_vm2, %v969_v24, %v965_v29  ;;  %vm993_vm6 = vweird.f32 %v2922_v43  ;;  %v1005_v8 = vmul.f32 %v2965_v10, %v1004_v47  ;;  %v1048_v23 = vmul.f32 %v3052_v6, %v2536_v51 }
 0x24d   : > { %v3090_v57 = vpop.eup %1558  ;;  %v991_v63 = vadd.f32 %v2922_v43, %v990_v46  ;;  %vm1022_vm7 = vweird.f32 %v2523_v27  ;;  %v1026_v35 = vand.u32 2147483647, %v2523_v27  ;;  %v1028_v41 = vand.u32 2147483648, %v2523_v27  ;;  %vm3123_vm9 = vmor %vm992_vm12, %vm993_vm6 }
 0x24e   : > { %v1034_v62 = vsub.f32 1.0, %v1033_v25  ;;  %v3096_v24 = vpop.eup %1560  ;;  %vm1008_vm1 = vweird.f32 %v2965_v10  ;;  %vm3107_vm4 = vcmp.eq.f32.partialorder %v1011_v40, 8.507059e+37  ;;  %v1014_v15 = vor.u32 1.1754944e-38, %v1013_v42 }
 0x24f   : > { %v1041_v5 = vand.u32 2147483647, %v2531_v61  ;;  %v980_v55 = vsel %vm3102_vm8, %v2907_v18, %v976_v2  ;;  %v1020_v32 = vmul.f32 %v2986_v45, %v1019_v44  ;;  %vm1037_vm2 = vweird.f32 %v2531_v61  ;;  %vm3152_vm13 = vmor %vm1007_vm3, %vm1008_vm1 }
 0x250   : > { %v1043_v19 = vand.u32 2147483648, %v2531_v61  ;;  %1562 = vrcp.f32 %v3875_v3  ;;  %v1006_v52 = vadd.f32 %v2965_v10, %v1005_v8  ;;  %v1049_v20 = vsub.f32 1.0, %v1048_v23 }
 0x251   : > { %v1063_v18 = vmul.f32 %v3090_v57, %v3863_v33  ;;  %1564 = vrcp.f32 %v3878_v0  ;;  %v995_v34 = vsel %vm3123_vm9, %v2922_v43, %v991_v63  ;;  %vm3134_vm11 = vcmp.eq.f32.partialorder %v1026_v35, 8.507059e+37  ;;  %v3885_v35 = vld [vmem:[#allocation44_spill] sm:$0xff] }
 0x252   : > { %v1029_v14 = vor.u32 1.1754944e-38, %v1028_v41  ;;  %v1035_v60 = vmul.f32 %v3017_v59, %v1034_v62  ;;  %v1078_v47 = vmul.f32 %v3096_v24, %v3866_v12  ;;  %v3143_v29 = vsel %vm3062_vm5, %v984_v9, %v980_v55 }
 0x253   : > { %vm1023_vm14 = vweird.f32 %v2986_v45  ;;  %v1056_v46 = vand.u32 2147483647, %v2536_v51  ;;  %v1058_v43 = vand.u32 2147483648, %v2536_v51  ;;  %v1021_v40 = vadd.f32 %v2986_v45, %v1020_v32 }
 0x254   : > { %vm3157_vm10 = vcmp.eq.f32.partialorder %v1041_v5, 8.507059e+37  ;;  %v1044_v9 = vor.u32 1.1754944e-38, %v1043_v19  ;;  %vm1052_vm12 = vweird.f32 %v2536_v51  ;;  %v3164_v42 = vsel %vm3077_vm15, %v999_v13, %v995_v34  ;;  %vm3181_vm0 = vmor %vm1022_vm7, %vm1023_vm14 }
 0x255   : > { %v1010_v58 = vsel %vm3152_vm13, %v2965_v10, %v1006_v52  ;;  %v1050_v2 = vmul.f32 %v3052_v6, %v1049_v20  ;;  %v1064_v44 = vsub.f32 1.0, %v1063_v18  ;;  %v1036_v23 = vadd.f32 %v3017_v59, %v1035_v60  ;;  %v3892_v20 = vld [vmem:[#allocation45_spill] sm:$0xff] }
 0x256   : > { %v3170_v8 = vpop.eup %1562  ;;  %vm1038_vm5 = vweird.f32 %v3017_v59  ;;  %v1079_v63 = vsub.f32 1.0, %v1078_v47  ;;  %1566 = vrcp.f32 %v3885_v35  ;;  %vm3185_vm15 = vcmp.eq.f32.partialorder %v1056_v46, 8.507059e+37 }
 0x257   : > { %v3175_v41 = vpop.eup %1564  ;;  %v1059_v13 = vor.u32 1.1754944e-38, %v1058_v43  ;;  %vm1067_vm3 = vweird.f32 %v3863_v33  ;;  %v1071_v62 = vand.u32 2147483647, %v3863_v33  ;;  %v1073_v26 = vand.u32 2147483648, %v3863_v33  ;;  %vm3203_vm6 = vmor %vm1037_vm2, %vm1038_vm5  ;;  %v3915_v33 = vld [vmem:[#allocation12_spill] sm:$0xff] }
 0x258   : > { %v3194_v5 = vsel %vm3107_vm4, %v1014_v15, %v1010_v58  ;;  %v1025_v27 = vsel %vm3181_vm0, %v2986_v45, %v1021_v40  ;;  %v1086_v55 = vand.u32 2147483647, %v3866_v12  ;;  %v1088_v32 = vand.u32 2147483648, %v3866_v12 }
 0x259   : > { %v1051_v21 = vadd.f32 %v3052_v6, %v1050_v2  ;;  %vm1053_vm7 = vweird.f32 %v3052_v6  ;;  %v1065_v39 = vmul.f32 %v3090_v57, %v1064_v44  ;;  %v1093_v15 = vmul.f32 %v3170_v8, %v3875_v3 }
 0x25a   : > { %v1040_v45 = vsel %vm3203_vm6, %v3017_v59, %v1036_v23  ;;  %v1080_v52 = vmul.f32 %v3096_v24, %v1079_v63  ;;  %v1108_v61 = vmul.f32 %v3175_v41, %v3878_v0  ;;  %1568 = vrcp.f32 %v3892_v20  ;;  %vm3232_vm4 = vmor %vm1052_vm12, %vm1053_vm7 }
 0x25b   : > { %v3221_v18 = vsel %vm3134_vm11, %v1029_v14, %v1025_v27  ;;  %vm3223_vm8 = vcmp.eq.f32.partialorder %v1071_v62, 8.507059e+37  ;;  %v1074_v60 = vor.u32 1.1754944e-38, %v1073_v26  ;;  %vm1082_vm1 = vweird.f32 %v3866_v12  ;;  %v3935_v12 = vld [vmem:[#allocation18_spill] sm:$0xff] }
 0x25c   : > { %v3228_v47 = vpop.eup %1566  ;;  %vm1068_vm2 = vweird.f32 %v3090_v57  ;;  %vm3237_vm9 = vcmp.eq.f32.partialorder %v1086_v55, 8.507059e+37  ;;  %v1089_v14 = vor.u32 1.1754944e-38, %v1088_v32  ;;  %v1103_v46 = vand.u32 2147483648, %v3875_v3  ;;  %v3902_v55 = vld [vmem:[#allocation47_spill] sm:$0xff]  ;;  %v3905_v32 = vld [vmem:[#allocation48_spill] sm:$0xff] }
 0x25d   : > { %v3244_v43 = vsel %vm3157_vm10, %v1044_v9, %v1040_v45  ;;  %v1055_v51 = vsel %vm3232_vm4, %v3052_v6, %v1051_v21  ;;  %v1066_v25 = vadd.f32 %v3090_v57, %v1065_v39  ;;  %v1094_v40 = vsub.f32 1.0, %v1093_v15  ;;  %v3899_v6 = vld [vmem:[#allocation46_spill] sm:$0xff]  ;;  %vm3269_vm13 = vmor %vm1067_vm3, %vm1068_vm2  ;;  %v3906_v39 = vld [vmem:[#allocation49_spill] sm:$0xff] }
 0x25e   : > { %v1081_v58 = vadd.f32 %v3096_v24, %v1080_v52  ;;  %vm1083_vm11 = vweird.f32 %v3096_v24  ;;  %v1101_v2 = vand.u32 2147483647, %v3875_v3  ;;  %v1109_v44 = vsub.f32 1.0, %v1108_v61 }
 0x25f   : > { %vm1097_vm14 = vweird.f32 %v3875_v3  ;;  %v1116_v1 = vand.u32 2147483647, %v3878_v0  ;;  %v1118_v9 = vand.u32 2147483648, %v3878_v0  ;;  %v1123_v23 = vmul.f32 %v3228_v47, %v3885_v35  ;;  %vm3285_vm12 = vmor %vm1082_vm1, %vm1083_vm11 }
 0x260   : > { %1570 = vrcp.f32 %v3899_v6  ;;  %v3259_v63 = vpop.eup %1568  ;;  %v3263_v10 = vsel %vm3185_vm15, %v1059_v13, %v1055_v51  ;;  %v3273_v26 = vor.u32 1.1754944e-38, %v1103_v46  ;;  %vm1112_vm10 = vweird.f32 %v3878_v0 }
 0x261   : > { %v1133_v27 = vand.u32 2147483648, %v3885_v35  ;;  %1572 = vrcp.f32 %v3902_v55  ;;  %v1070_v16 = vsel %vm3269_vm13, %v3090_v57, %v1066_v25  ;;  %v1095_v13 = vmul.f32 %v3170_v8, %v1094_v40 }
 0x262   : > { %vm1098_vm5 = vweird.f32 %v3170_v8  ;;  %1574 = vrcp.f32 %v3905_v32  ;;  %v1085_v19 = vsel %vm3285_vm12, %v3096_v24, %v1081_v58  ;;  %v1110_v57 = vmul.f32 %v3175_v41, %v1109_v44 }
 0x263   : > { %v1131_v21 = vand.u32 2147483647, %v3885_v35  ;;  %1576 = vrcp.f32 %v3906_v39  ;;  %vm3298_vm0 = vcmp.eq.f32.partialorder %v1101_v2, 8.507059e+37  ;;  %v3302_v15 = vor.u32 1.1754944e-38, %v1118_v9  ;;  %vm3357_vm1 = vmor %vm1097_vm14, %vm1098_vm5 }
 0x264   : > { %v1124_v45 = vsub.f32 1.0, %v1123_v23  ;;  %v1138_v52 = vmul.f32 %v3259_v63, %v3892_v20  ;;  %1578 = vrcp.f32 %v2742_v11  ;;  %v3309_v24 = vsel %vm3223_vm8, %v1074_v60, %v1070_v16  ;;  %v3911_v60 = vld [vmem:[#allocation8_spill] sm:$0xff]  ;;  %v3914_v16 = vld [vmem:[#allocation11_spill] sm:$0xff] }
 0x265   : > { %vm1113_vm15 = vweird.f32 %v3175_v41  ;;  %v3312_v61 = vor.u32 1.1754944e-38, %v1133_v27  ;;  %v1148_v59 = vand.u32 2147483648, %v3892_v20  ;;  %v3319_v51 = vsel %vm3237_vm9, %v1089_v14, %v1085_v19  ;;  %v3912_v14 = vld [vmem:[#allocation9_spill] sm:$0xff] }
 0x266   : > { %v3315_v46 = vpop.eup %1570  ;;  %v1096_v25 = vadd.f32 %v3170_v8, %v1095_v13  ;;  %vm3322_vm3 = vcmp.eq.f32.partialorder %v1116_v1, 8.507059e+37  ;;  %vm1127_vm6 = vweird.f32 %v3885_v35  ;;  %v1146_v34 = vand.u32 2147483647, %v3892_v20  ;;  %v3913_v1 = vld [vmem:[#allocation10_spill] sm:$0xff]  ;;  %vm3379_vm2 = vmor %vm1112_vm10, %vm1113_vm15 }
 0x267   : > { %v1227_v58 = vmul.f32 %v2764_v53, %v3911_v60  ;;  %v3330_v2 = vpop.eup %1572  ;;  %v1111_v7 = vadd.f32 %v3175_v41, %v1110_v57  ;;  %vm1128_vm7 = vweird.f32 %v3228_v47  ;;  %v1228_v44 = vmul.f32 %v2769_v31, %v3912_v14  ;;  %v3919_v57 = vld [vmem:[#allocation13_spill] sm:$0xff]  ;;  %v3927_v14 = vld [vmem:[#allocation15_spill] sm:$0xff] }
 0x268   : > { %v1229_v9 = vmul.f32 %v2791_v37, %v3913_v1  ;;  %v3338_v23 = vpop.eup %1574  ;;  %v1125_v62 = vmul.f32 %v3228_v47, %v1124_v45  ;;  %v1139_v27 = vsub.f32 1.0, %v1138_v52  ;;  %v1230_v53 = vmul.f32 %v2845_v36, %v3914_v16  ;;  %v3929_v16 = vld [vmem:[#allocation16_spill] sm:$0xff]  ;;  %v3951_v60 = vld [vmem:[#allocation23_spill] sm:$0xff] }
 0x269   : > { %v1231_v13 = vmul.f32 %v2850_v22, %v3915_v33  ;;  %vm3916_vm8 = vcmask 261120   ;;  %v3351_v31 = vpop.eup %1576  ;;  %v3361_v36 = vor.u32 1.1754944e-38, %v1148_v59  ;;  %v1153_v22 = vmul.f32 %v3315_v46, %v3899_v6 }
 0x26a   : > { %1259 = vst.msk [vmem:[%s3347_s6] sm:$0xff] %vm3916_vm8, %v1227_v58  ;;  %v1161_v19 = vand.u32 2147483647, %v3899_v6  ;;  %v1232_v45 = vmul.f32 %v2865_v4, %v3919_v57  ;;  %vm3920_vm4 = vmmov %vm3916_vm8  ;;  %v3370_v52 = vpop.eup %1578  ;;  %v1100_v3 = vsel %vm3357_vm1, %v3170_v8, %v1096_v25  ;;  %vm3383_vm9 = vcmp.eq.f32.partialorder %v1131_v21, 8.507059e+37  ;;  %v3925_v25 = vld [vmem:[#allocation14_spill] sm:$0xff]  ;;  %v3939_v57 = vld [vmem:[#allocation19_spill] sm:$0xff] }
 0x26b   : > { %1260 = vst.msk [vmem:[%s3347_s6 + $0x8] sm:$0xff] %vm3920_vm4, %v1228_v44  ;;  %vm1142_vm11 = vweird.f32 %v3892_v20  ;;  %v1163_v4 = vand.u32 2147483648, %v3899_v6  ;;  %v1168_v8 = vmul.f32 %v3330_v2, %v3902_v55  ;;  %v1233_v58 = vmul.f32 %v2887_v49, %v3925_v25  ;;  %vm3926_vm14 = vmmov %vm3920_vm4 }
 0x26c   : > { %1261 = vst.msk [vmem:[%s3347_s6 + $0x10] sm:$0xff] %vm3926_vm14, %v1229_v9  ;;  %v1115_v0 = vsel %vm3379_vm2, %v3175_v41, %v1111_v7  ;;  %vm1143_vm13 = vweird.f32 %v3259_v63  ;;  %v1183_v21 = vmul.f32 %v3338_v23, %v3905_v32  ;;  %v1234_v44 = vmul.f32 %v2912_v30, %v3927_v14  ;;  %vm3928_vm10 = vmmov %vm3920_vm4 }
 0x26d   : > { %1262 = vst.msk [vmem:[%s3347_s6 + $0x18] sm:$0xff] %vm3928_vm10, %v1230_v53  ;;  %v1126_v49 = vadd.f32 %v3228_v47, %v1125_v62  ;;  %v1140_v1 = vmul.f32 %v3259_v63, %v1139_v27  ;;  %v1198_v9 = vmul.f32 %v3351_v31, %v3906_v39  ;;  %v1235_v41 = vmul.f32 %v2927_v17, %v3929_v16  ;;  %vm3930_vm12 = vmmov %vm3920_vm4  ;;  %v3931_v53 = vld [vmem:[#allocation17_spill] sm:$0xff] }
 0x26e   : > { %1263 = vst.msk [vmem:[%s3347_s6 + $0x20] sm:$0xff] %vm3930_vm12, %v1231_v13  ;;  %v3416_v7 = vsel %vm3298_vm0, %v3273_v26, %v1100_v3  ;;  %v1154_v30 = vsub.f32 1.0, %v1153_v22  ;;  %v1213_v62 = vmul.f32 %v3370_v52, %v2742_v11  ;;  %v1236_v27 = vmul.f32 %v2932_v50, %v3931_v53  ;;  %vm3932_vm5 = vmmov %vm3920_vm4  ;;  %v3941_v3 = vld [vmem:[#allocation20_spill] sm:$0xff]  ;;  %v3959_v53 = vld [vmem:[#allocation26_spill] sm:$0xff] }
 0x26f   : > { %1264 = vst.msk [vmem:[%s3347_s6 + $0x28] sm:$0xff] %vm3932_vm5, %v1232_v45  ;;  %vm3424_vm15 = vcmp.eq.f32.partialorder %v1146_v34, 8.507059e+37  ;;  %v3428_v17 = vor.u32 1.1754944e-38, %v1163_v4  ;;  %v1169_v13 = vsub.f32 1.0, %v1168_v8  ;;  %v1178_v26 = vand.u32 2147483648, %v3902_v55  ;;  %vm3936_vm0 = vmmov %vm3920_vm4  ;;  %v3943_v8 = vld [vmem:[#allocation21_spill] sm:$0xff] }
 0x270   : > { %v1237_v37 = vmul.f32 %v2978_v48, %v3935_v12  ;;  %1265 = vst.msk [vmem:[%s3347_s6 + $0x30] sm:$0xff] %vm3936_vm0, %v1233_v58  ;;  %v3438_v50 = vsel %vm3322_vm3, %v3302_v15, %v1115_v0  ;;  %vm3444_vm8 = vmor %vm1127_vm6, %vm1128_vm7  ;;  %vm1157_vm1 = vweird.f32 %v3899_v6  ;;  %v1176_v48 = vand.u32 2147483647, %v3902_v55 }
 0x271   : > { %v1184_v22 = vsub.f32 1.0, %v1183_v21  ;;  %v1238_v45 = vmul.f32 %v3042_v38, %v3939_v57  ;;  %vm3940_vm4 = vmmov %vm3936_vm0  ;;  %v1130_v35 = vsel %vm3444_vm8, %v3228_v47, %v1126_v49  ;;  %v1141_v15 = vadd.f32 %v3259_v63, %v1140_v1 }
 0x272   : > { %1266 = vst.msk [vmem:[%s3347_s6 + $0x38] sm:$0xff] %vm3940_vm4, %v1234_v44  ;;  %vm1172_vm3 = vweird.f32 %v3902_v55  ;;  %v1199_v40 = vsub.f32 1.0, %v1198_v9  ;;  %v1239_v59 = vmul.f32 %v3057_v56, %v3941_v3  ;;  %vm3942_vm6 = vmmov %vm3936_vm0  ;;  %v1155_v4 = vmul.f32 %v3315_v46, %v1154_v30  ;;  %v3945_v56 = vld [vmem:[#allocation22_spill] sm:$0xff]  ;;  %v3955_v9 = vld [vmem:[#allocation24_spill] sm:$0xff] }
 0x273   : > { %1267 = vst.msk [vmem:[%s3347_s6 + $0x40] sm:$0xff] %vm3942_vm6, %v1235_v41  ;;  %vm1158_vm7 = vweird.f32 %v3315_v46  ;;  %v1214_v38 = vsub.f32 1.0, %v1213_v62  ;;  %v1240_v25 = vmul.f32 %v3071_v28, %v3943_v8  ;;  %vm3944_vm2 = vmmov %vm3936_vm0  ;;  %v1170_v47 = vmul.f32 %v3330_v2, %v1169_v13  ;;  %v3957_v41 = vld [vmem:[#allocation25_spill] sm:$0xff]  ;;  %v3991_v28 = vld [vmem:[#allocation36_spill] sm:$0xff] }
 0x274   : > { %1268 = vst.msk [vmem:[%s3347_s6 + $0x48] sm:$0xff] %vm3944_vm2, %v1236_v27  ;;  %v3470_v58 = vor.u32 1.1754944e-38, %v1178_v26  ;;  %vm1187_vm14 = vweird.f32 %v3905_v32  ;;  %v1241_v0 = vmul.f32 %v3084_v54, %v3945_v56  ;;  %vm3946_vm10 = vmmov %vm3936_vm0  ;;  %v3480_v21 = vsel %vm3383_vm9, %v3312_v61, %v1130_v35  ;;  %v3961_v26 = vld [vmem:[#allocation27_spill] sm:$0xff] }
 0x275   : > { %1269 = vst.msk [vmem:[%s3347_s6 + $0x50] sm:$0xff] %vm3946_vm10, %v1237_v37  ;;  %vm3486_vm12 = vmor %vm1142_vm11, %vm1143_vm13  ;;  %vm3490_vm5 = vcmp.eq.f32.partialorder %v1161_v19, 8.507059e+37  ;;  %v1185_v54 = vmul.f32 %v3338_v23, %v1184_v22  ;;  %v1191_v44 = vand.u32 2147483647, %v3905_v32  ;;  %v1242_v61 = vmul.f32 %v3143_v29, %v3951_v60  ;;  %v3965_v37 = vld [vmem:[#allocation28_spill] sm:$0xff]  ;;  %v3989_v56 = vld [vmem:[#allocation35_spill] sm:$0xff] }
 0x276   : > { %vm3952_vm9 = vmmov %vm3936_vm0  ;;  %v1145_v20 = vsel %vm3486_vm12, %v3259_v63, %v1141_v15  ;;  %vm3503_vm11 = vcmp.eq.f32.partialorder %v1176_v48, 8.507059e+37  ;;  %v1193_v19 = vand.u32 2147483648, %v3905_v32  ;;  %v1200_v1 = vmul.f32 %v3351_v31, %v1199_v40  ;;  %v3995_v60 = vld [vmem:[#allocation38_spill] sm:$0xff] }
 0x277   : > { %1270 = vst.msk [vmem:[%s3347_s6 + $0x58] sm:$0xff] %vm3952_vm9, %v1238_v45  ;;  %v1243_v16 = vmul.f32 %v3164_v42, %v3955_v9  ;;  %vm3956_vm13 = vmmov %vm3936_vm0  ;;  %v1156_v29 = vadd.f32 %v3315_v46, %v1155_v4  ;;  %vm1202_vm0 = vweird.f32 %v3906_v39  ;;  %v1215_v63 = vmul.f32 %v3370_v52, %v1214_v38  ;;  %v3975_v45 = vld [vmem:[#allocation30_spill] sm:$0xff]  ;;  %v3985_v38 = vld [vmem:[#allocation33_spill] sm:$0xff] }
 0x278   : > { %1271 = vst.msk [vmem:[%s3347_s6 + $0x60] sm:$0xff] %vm3956_vm13, %v1239_v59  ;;  %v1244_v30 = vmul.f32 %v3194_v5, %v3957_v41  ;;  %vm3958_vm8 = vmmov %vm3944_vm2  ;;  %v1171_v62 = vadd.f32 %v3330_v2, %v1170_v47  ;;  %vm1173_vm4 = vweird.f32 %v3330_v2  ;;  %v1206_v42 = vand.u32 2147483647, %v3906_v39  ;;  %v3987_v47 = vld [vmem:[#allocation34_spill] sm:$0xff] }
 0x279   : > { %1272 = vst.msk [vmem:[%s3347_s6 + $0x68] sm:$0xff] %vm3958_vm8, %v1240_v25  ;;  %v1245_v27 = vmul.f32 %v3221_v18, %v3959_v53  ;;  %vm3960_vm6 = vmmov %vm3944_vm2  ;;  %v1150_v13 = vsel %vm3424_vm15, %v3361_v36, %v1145_v20  ;;  %v1186_v5 = vadd.f32 %v3338_v23, %v1185_v54  ;;  %vm1188_vm2 = vweird.f32 %v3338_v23  ;;  %v3993_v54 = vld [vmem:[#allocation37_spill] sm:$0xff]  ;;  %v3997_v20 = vld [vmem:[#allocation39_spill] sm:$0xff] }
 0x27a   : > { %1273 = vst.msk [vmem:[%s3347_s6 + $0x70] sm:$0xff] %vm3960_vm6, %v1241_v0  ;;  %v1246_v12 = vmul.f32 %v3244_v43, %v3961_v26  ;;  %vm3962_vm10 = vmmov %vm3960_vm6  ;;  %v1201_v36 = vadd.f32 %v3351_v31, %v1200_v1  ;;  %vm1203_vm15 = vweird.f32 %v3351_v31  ;;  %v1208_v33 = vand.u32 2147483648, %v3906_v39 }
 0x27b   : > { %1274 = vst.msk [vmem:[%s3347_s6 + $0x78] sm:$0xff] %vm3962_vm10, %v1242_v61  ;;  %vm3540_vm12 = vmor %vm1157_vm1, %vm1158_vm7  ;;  %v1247_v43 = vmul.f32 %v3263_v10, %v3965_v37  ;;  %v1216_v48 = vadd.f32 %v3370_v52, %v1215_v63  ;;  %vm1218_vm7 = vweird.f32 %v3370_v52  ;;  %v3969_v10 = vld [vmem:[#allocation29_spill] sm:$0xff]  ;;  %vm3579_vm8 = vcmp.eq.f32.partialorder %v1191_v44, 8.507059e+37 }
 0x27c   : > { %vm3966_vm9 = vmmov %vm3960_vm6  ;;  %v1160_v6 = vsel %vm3540_vm12, %v3315_v46, %v1156_v29  ;;  %v1248_v22 = vmul.f32 %v3309_v24, %v3969_v10  ;;  %v1223_v24 = vand.u32 2147483648, %v2742_v11  ;;  %v1249_v35 = vmul.f32 %v3319_v51, %v3975_v45  ;;  %v3979_v51 = vld [vmem:[#allocation31_spill] sm:$0xff] }
 0x27d   : > { %1275 = vst.msk [vmem:[%s3347_s6 + $0x80] sm:$0xff] %vm3966_vm9, %v1243_v16  ;;  %vm3558_vm1 = vmor %vm1172_vm3, %vm1173_vm4  ;;  %v1221_v15 = vand.u32 2147483647, %v2742_v11  ;;  %v1250_v40 = vmul.f32 %v3416_v7, %v3979_v51  ;;  %v1165_v39 = vsel %vm3490_vm5, %v3428_v17, %v1160_v6  ;;  %v3983_v7 = vld [vmem:[#allocation32_spill] sm:$0xff]  ;;  %v1209_v4 = vor.u32 1.1754944e-38, %v1208_v33 }
 0x27e   : > { %vm3970_vm13 = vmmov %vm3960_vm6  ;;  %v1175_v46 = vsel %vm3558_vm1, %v3330_v2, %v1171_v62  ;;  %v1251_v59 = vmul.f32 %v3438_v50, %v3983_v7  ;;  %v1252_v8 = vmul.f32 %v3480_v21, %v3985_v38  ;;  %vm1207_vm12 = vcmp.eq.f32.partialorder %v1206_v42, 8.507059e+37 }
 0x27f   : > { %1276 = vst.msk [vmem:[%s3347_s6 + $0x88] sm:$0xff] %vm3970_vm13, %v1244_v30  ;;  %vm3575_vm3 = vmor %vm1187_vm14, %vm1188_vm2  ;;  %v1180_v17 = vsel %vm3503_vm11, %v3470_v58, %v1175_v46  ;;  %v1224_v25 = vor.u32 1.1754944e-38, %v1223_v24  ;;  %v1253_v58 = vmul.f32 %v1150_v13, %v3987_v47  ;;  %v1254_v0 = vmul.f32 %v1165_v39, %v3989_v56 }
 0x280   : > { %vm3976_vm4 = vmmov %vm3960_vm6  ;;  %v1190_v32 = vsel %vm3575_vm3, %v3338_v23, %v1186_v5  ;;  %vm1217_vm6 = vweird.f32 %v2742_v11  ;;  %v1194_v23 = vor.u32 1.1754944e-38, %v1193_v19  ;;  %v1255_v14 = vmul.f32 %v1180_v17, %v3991_v28 }
 0x281   : > { %1277 = vst.msk [vmem:[%s3347_s6 + $0x90] sm:$0xff] %vm3976_vm4, %v1245_v27  ;;  %vm3595_vm14 = vmor %vm1202_vm0, %vm1203_vm15  ;;  %vm1222_vm15 = vcmp.eq.f32.partialorder %v1221_v15, 8.507059e+37 }
 0x282   : > { %vm3980_vm2 = vmmov %vm3976_vm4  ;;  %v1205_v3 = vsel %vm3595_vm14, %v3351_v31, %v1201_v36  ;;  %v1195_v50 = vsel %vm3579_vm8, %v1194_v23, %v1190_v32 }
 0x283   : > { %1278 = vst.msk [vmem:[%s3347_s6 + $0x98] sm:$0xff] %vm3980_vm2, %v1246_v12  ;;  %vm3614_vm0 = vmor %vm1217_vm6, %vm1218_vm7  ;;  %v1256_v44 = vmul.f32 %v1195_v50, %v3993_v54 }
 0x284   : > { %vm3984_vm10 = vmmov %vm3980_vm2  ;;  %v1220_v31 = vsel %vm3614_vm0, %v3370_v52, %v1216_v48  ;;  %v1210_v52 = vsel %vm1207_vm12, %v1209_v4, %v1205_v3 }
 0x285   : > { %1279 = vst.msk [vmem:[%s3347_s6 + $0xa0] sm:$0xff] %vm3984_vm10, %v1247_v43  ;;  %vm3986_vm5 = vmmov %vm3980_vm2  ;;  %v1225_v21 = vsel %vm1222_vm15, %v1224_v25, %v1220_v31  ;;  %v1257_v61 = vmul.f32 %v1210_v52, %v3995_v60 }
 0x286   : > { %1280 = vst.msk [vmem:[%s3347_s6 + $0xa8] sm:$0xff] %vm3986_vm5, %v1248_v22  ;;  %vm3988_vm11 = vmmov %vm3980_vm2  ;;  %v1258_v49 = vmul.f32 %v1225_v21, %v3997_v20 }
 0x287   : > { %1281 = vst.msk [vmem:[%s3347_s6 + $0xb0] sm:$0xff] %vm3988_vm11, %v1249_v35  ;;  %vm3990_vm9 = vmmov %vm3980_vm2 }
 0x288   : > { %1282 = vst.msk [vmem:[%s3347_s6 + $0xb8] sm:$0xff] %vm3990_vm9, %v1250_v40  ;;  %vm3992_vm1 = vmmov %vm3980_vm2 }
 0x289   : > { %1283 = vst.msk [vmem:[%s3347_s6 + $0xc0] sm:$0xff] %vm3992_vm1, %v1251_v59  ;;  %vm3994_vm7 = vmmov %vm3992_vm1 }
 0x28a   : > { %1284 = vst.msk [vmem:[%s3347_s6 + $0xc8] sm:$0xff] %vm3994_vm7, %v1252_v8  ;;  %vm3996_vm13 = vmmov %vm3992_vm1 }
 0x28b   : > { %1285 = vst.msk [vmem:[%s3347_s6 + $0xd0] sm:$0xff] %vm3996_vm13, %v1253_v58  ;;  %vm3998_vm3 = vmmov %vm3992_vm1 }
 0x28c   : > { %1286 = vst.msk [vmem:[%s3347_s6 + $0xd8] sm:$0xff] %vm3998_vm3, %v1254_v0  ;;  %vm3999_vm8 = vmmov %vm3992_vm1 }
 0x28d   : > { %1287 = vst.msk [vmem:[%s3347_s6 + $0xe0] sm:$0xff] %vm3999_vm8, %v1255_v14  ;;  %vm4000_vm4 = vmmov %vm3992_vm1 }
 0x28e   : > { %1288 = vst.msk [vmem:[%s3347_s6 + $0xe8] sm:$0xff] %vm4000_vm4, %v1256_v44  ;;  %vm4001_vm14 = vmmov %vm3992_vm1 }
 0x28f   : > { %1289 = vst.msk [vmem:[%s3347_s6 + $0xf0] sm:$0xff] %vm4001_vm14, %v1257_v61  ;;  %vm4002_vm6 = vmmov %vm3992_vm1 }
 0x290   : > { %1290 = vst.msk [vmem:[%s3347_s6 + $0xf8] sm:$0xff] %vm4002_vm6, %v1258_v49 }
 0x291   : > { %1637 = shalt.err (!%p1634_p4)
}
 0x292   : > { %s1680_s7 = smov 128   ;;  %s1681_s5 = smov 8  }
 0x293   : > { %1400 = dma.vmem_to_hbm [thread:$0]  (%p1757_p11), %s1305_s26, 4096, %s1307_s9, %s1292_s11, %s1680_s7, %s1680_s7, %s1681_s5  }
 0x294 PF: > { %s1321_s29 = sand.u32 1, %s1664_s15   ;;  %p4003_p7 = scmp.ge.s32.totalorder %s1676_s18, 2 }
 0x295   : > { %s1322_s6 = scalar_lea.sflag [#allocation4], %s1321_s29 }
 0x296   : > { %p1407_p5 = pnand %p4003_p7, %p1761_p12 }
 0x298   : > { %p1408_p8 = pneg %p1407_p5 }
 0x29a   : > { %1659 = dma.done.wait (%p1408_p8), %s1322_s6, 4096  }
 0x29b   : > { %1661 = vsyncadd (%p1408_p8), %s1322_s6, 4294963200  ;;  %p17_p10 = scmp.ge.s32.totalorder %s1732_s21, 4   ;;  %s4004_s15 = smov %s1668_s16 }
 0x29c   : > { %s4005_s16 = smov %s1672_s17  ;;  %s4006_s17 = smov %s1744_s24 }
 0x29d   : > { %s4007_s18 = smov %s1732_s21  ;;  %19 = sbr.rel (!%p17_p10) target bundleno = 5 (0x5), region = 81 }
 0x2a2   :  { %1328 = vsyncpa [#allocation3], 1 }
 0x2a3   :  { %1330 = vsyncpa [#allocation3 + $0x1], 1 }
 0x2a4   :  { %1331 = vsyncpa [#allocation4], 1 }
 0x2a5   :  { %1333 = vsyncpa [#allocation4 + $0x1], 1 }

</bundles_post_ra>
